<compile_context>
chip_gen: v6e
topology: v6e:2x2x1
jax: 0.10.0
libtpu: 0.0.40
codegen_flags: <defaults>
</compile_context>

<pallas_src>
import jax
import jax.numpy as jnp
from jax.experimental import pallas as pl
from jax.experimental.pallas import tpu as pltpu


# ----------------------------------------------------------------------------- kernel
def _self_attn_out_kernel(m_ref, x_ref, wt_ref, p_ref, o_ref, acc_ref):
    """Grid = (row tiles [parallel], K_in tiles [arbitrary, reduction])."""
    k = pl.program_id(1)

    @pl.when(k == 0)
    def _():
        acc_ref[...] = jnp.zeros_like(acc_ref)

    # MXU matmul: bf16 operands, f32 accumulation.  The weight arrives already
    # transposed to (K_in, K_out) and already bf16 (prepared once at load time),
    # so the MXU consumes it directly -- no per-step transpose, no per-call cast.
    acc_ref[...] += jnp.dot(
        m_ref[...].astype(jnp.bfloat16), wt_ref[...],
        preferred_element_type=jnp.float32)

    # TODO(synk): dropout is identity in eval mode; training-mode dropout would
    # build a keep mask from pltpu.prng_seed / pltpu.prng_random_bits.

    @pl.when(k == pl.num_programs(1) - 1)
    def _():
        p = p_ref[...]                                   # (3, K) packed params
        bias, gamma, beta = p[0:1, :], p[1:2, :], p[2:3, :]
        # Residual + LayerNorm(eps=1e-12), all in f32 (VPU + EUP rsqrt).
        h = x_ref[...].astype(jnp.float32) + acc_ref[...] + bias
        mean = jnp.mean(h, axis=-1, keepdims=True)
        c = h - mean
        var = jnp.mean(c * c, axis=-1, keepdims=True)
        inv = jax.lax.rsqrt(var + 1e-12)
        o_ref[...] = (c * inv * gamma + beta).astype(o_ref.dtype)


# ----------------------------------------------------------------------------- helpers
def _sublane_min(dtype):
    return {4: 8, 2: 16, 1: 32}.get(jnp.dtype(dtype).itemsize, 8)


def _vmem_cap_bytes():
    """~75% of physical VMEM: ~96 MiB on v5e/v6e, ~48 MiB on v7x."""
    try:
        phys = int(pltpu.get_tpu_info().vmem_capacity_bytes)
    except Exception:
        phys = 64 << 20                      # conservative (v7x per-TC) fallback
    return max((phys * 3) // 4, 32 << 20)


def _vmem_needed(block_n, block_k, K, act_bytes, out_bytes):
    w_bufs = 1 if block_k == K else 2        # resident weight is single-buffered
    return (w_bufs * block_k * K * 2                 # bf16 weight tile(s)
            + 2 * block_n * block_k * act_bytes      # m tiles (double-buffered)
            + 2 * block_n * K * act_bytes            # x tiles
            + 2 * block_n * K * out_bytes            # out tiles
            + 8 * K * 4                              # (3,K) params, 8-sublane pad
            + block_n * K * 4                        # f32 accumulator scratch
            + 3 * block_n * K * 4                    # compiler f32 intermediates
            + (4 << 20))                             # headroom


def _select_tiles(N, K, smin, act_bytes, out_bytes, vmem_cap):
    bn_all = [c for c in (1024, 512, 256, 128, 64, 32, 16, 8)
              if c <= N and N % c == 0 and c % smin == 0]
    if not bn_all:
        bn_all = [N]                         # tiny-N fallback: one full-height tile
    # Prefer >= 2 row tiles when N allows so the 'parallel' axis can be sharded
    # across both v7x TensorCores (harmless on single-TC v5e/v6e).
    bn_cands = [c for c in bn_all if N // c >= 2] or bn_all

    bk_cands, bk = [K], K                    # resident weight first, then K-split
    while bk % 2 == 0 and (bk // 2) >= 128 and (bk // 2) % 128 == 0:
        bk //= 2
        bk_cands.append(bk)

    for bk in bk_cands:
        for bn in bn_cands:
            if _vmem_needed(bn, bk, K, act_bytes, out_bytes) <= vmem_cap:
                return bn, bk
    return bn_cands[-1], bk_cands[-1]


# ----------------------------------------------------------------------------- wrapper
def prepare_params(weight, bias, gamma, beta):
    """One-time parameter preparation (call at model load, NOT per forward):
      * nn.Linear weight (out, in) -> transposed to (in, out) and cast to bf16,
        so the MXU consumes it directly (no per-call HBM cast, no in-kernel
        transpose).
      * bias / LayerNorm gamma / beta packed into a single (3, K) f32 block.
    """
    wt = jnp.asarray(weight, jnp.float32).T.astype(jnp.bfloat16)     # (K_in, K_out)
    params = jnp.stack([jnp.asarray(bias, jnp.float32),
                        jnp.asarray(gamma, jnp.float32),
                        jnp.asarray(beta, jnp.float32)], axis=0)      # (3, K)
    return wt, params


def self_attention_output(m, x, weight_t, params, *, block_n=None, block_k=None,
                          out_dtype=None):
    """Fused Linear + (eval-mode) Dropout + residual + LayerNorm.

    m, x:      (N, K) activations (f32 or bf16; bf16 halves HBM traffic).
    weight_t:  (K, K) bf16, PRE-TRANSPOSED Linear weight (in, out) from prepare_params().
    params:    (3, K) f32 = [bias; ln_gamma; ln_beta] from prepare_params().
    """
    N, K = m.shape
    assert x.shape == (N, K)
    assert weight_t.shape == (K, K) and weight_t.dtype == jnp.bfloat16
    assert params.shape == (3, K)

    out_dtype = x.dtype if out_dtype is None else jnp.dtype(out_dtype)
    act_bytes = jnp.dtype(m.dtype).itemsize
    out_bytes = jnp.dtype(out_dtype).itemsize
    smin = _sublane_min(m.dtype)
    vmem_cap = _vmem_cap_bytes()

    bn_auto, bk_auto = _select_tiles(N, K, smin, act_bytes, out_bytes, vmem_cap)
    block_n = bn_auto if block_n is None else block_n
    block_k = bk_auto if block_k is None else block_k

    assert N % block_n == 0, f"N={N} must be divisible by block_n={block_n}"
    assert K % block_k == 0, f"K={K} must be divisible by block_k={block_k}"
    assert block_n == N or block_n % smin == 0, (
        f"block_n={block_n} below sublane minimum {smin} for dtype {m.dtype}")
    assert block_k == K or block_k % 128 == 0, "block_k must be 128-aligned or == K"

    needed = _vmem_needed(block_n, block_k, K, act_bytes, out_bytes)
    vmem_limit = int(min(max(needed, 32 << 20), vmem_cap))

    grid = (N // block_n, K // block_k)
    resident = dict(pipeline_mode=pl.Buffered(1))   # constant-index blocks
    w_mode = resident if block_k == K else {}       # K-split: keep double-buffered

    return pl.pallas_call(
        _self_attn_out_kernel,
        out_shape=jax.ShapeDtypeStruct((N, K), out_dtype),
        grid_spec=pltpu.PrefetchScalarGridSpec(
            num_scalar_prefetch=0,
            grid=grid,
            in_specs=[
                pl.BlockSpec((block_n, block_k), lambda i, k: (i, k)),       # m
                pl.BlockSpec((block_n, K), lambda i, k: (i, 0)),             # x
                pl.BlockSpec((block_k, K), lambda i, k: (k, 0), **w_mode),   # W^T
                pl.BlockSpec((3, K), lambda i, k: (0, 0), **resident),       # params
            ],
            out_specs=pl.BlockSpec((block_n, K), lambda i, k: (i, 0)),
            scratch_shapes=[pltpu.VMEM((block_n, K), jnp.float32)],          # f32 acc
        ),
        compiler_params=pltpu.CompilerParams(
            dimension_semantics=("parallel", "arbitrary"),
            vmem_limit_bytes=vmem_limit,
        ),
    )(m, x, weight_t, params)


# ----------------------------------------------------------------------------- reference / demo
def _reference(m, x, weight, bias, gamma, beta):
    agg = m.astype(jnp.float32) @ weight.T.astype(jnp.float32) + bias
    h = x.astype(jnp.float32) + agg
    mean = jnp.mean(h, axis=-1, keepdims=True)
    var = jnp.mean((h - mean) ** 2, axis=-1, keepdims=True)
    return ((h - mean) / jnp.sqrt(var + 1e-12)) * gamma + beta


if __name__ == "__main__":
    # 512 instances, hidden=256: small, but grid = (2, 1) so both v7x TCs get a tile.
    N, K = 512, 256

    key = jax.random.PRNGKey(0)
    km, kx, kw, kb, kg, kbeta = jax.random.split(key, 6)

    m = jax.random.normal(km, (N, K), dtype=jnp.float32)
    x = jax.random.normal(kx, (N, K), dtype=jnp.float32)

    bound = 1.0 / (K ** 0.5)
    weight = jax.random.uniform(kw, (K, K), minval=-bound, maxval=bound,
                                dtype=jnp.float32)       # nn.Linear (out, in)
    bias = jax.random.uniform(kb, (K,), minval=-bound, maxval=bound,
                              dtype=jnp.float32)
    gamma = 1.0 + 0.1 * jax.random.normal(kg, (K,), dtype=jnp.float32)
    beta = 0.1 * jax.random.normal(kbeta, (K,), dtype=jnp.float32)

    ref = _reference(m, x, weight, bias, gamma, beta)

    # One-time parameter prep (transpose + bf16 cast, param packing).
    wt_bf, packed = prepare_params(weight, bias, gamma, beta)

    # 1) Default (auto-tiled, resident weight) path.
    out = jax.block_until_ready(self_attention_output(m, x, wt_bf, packed))
    assert out.shape == (N, K)
    # bf16 MXU operands with f32 accumulation; LayerNorm keeps outputs O(1).
    assert jnp.allclose(out, ref, atol=3e-2, rtol=0.0), "mismatch (default path)"

    # 2) K-split accumulator path (forced block_k < K) -- exercises the large-K
    #    fallback that v7x needs at production hidden sizes.
    out_split = jax.block_until_ready(
        self_attention_output(m, x, wt_bf, packed, block_n=128, block_k=128))
    assert jnp.allclose(out_split, ref, atol=3e-2, rtol=0.0), "mismatch (K-split path)"

    # 3) bf16 activations in / bf16 out -- halves HBM traffic in the mem-bound regime.
    m_bf, x_bf = m.astype(jnp.bfloat16), x.astype(jnp.bfloat16)
    ref_bf = _reference(m_bf.astype(jnp.float32), x_bf.astype(jnp.float32),
                        weight, bias, gamma, beta)
    out_bf = jax.block_until_ready(
        self_attention_output(m_bf, x_bf, wt_bf, packed, out_dtype=jnp.bfloat16))
    assert jnp.allclose(out_bf.astype(jnp.float32), ref_bf, atol=6e-2, rtol=0.0), \
        "mismatch (bf16 I/O path)"

    print("KERNEL_OK")
</pallas_src>

<mosaic_0001>
module attributes {stable_mosaic.version = 11 : i64} {
  func.func @_self_attn_out_kernel(%arg0: i32, %arg1: i32, %arg2: memref<256x256xf32, #tpu.memory_space<vmem>>, %arg3: memref<256x256xf32, #tpu.memory_space<vmem>>, %arg4: memref<256x256xbf16, #tpu.memory_space<vmem>>, %arg5: memref<3x256xf32, #tpu.memory_space<vmem>>, %arg6: memref<256x256xf32, #tpu.memory_space<vmem>>, %arg7: memref<256x256xf32, #tpu.memory_space<vmem>>) attributes {dimension_semantics = [#tpu.dimension_semantics<parallel>, #tpu.dimension_semantics<arbitrary>], iteration_bounds = array<i64: 2, 1>, scalar_prefetch = 0 : i64, scratch_operands = 1 : i64, tpu.core_type = #tpu.core_type<tc>, window_params = [{transform_indices = @transform_0, window_bounds = array<i64: 256, 256>}, {transform_indices = @transform_1, window_bounds = array<i64: 256, 256>}, {pipeline_mode = #tpu.pipeline_mode<synchronous>, transform_indices = @transform_2, window_bounds = array<i64: 256, 256>}, {pipeline_mode = #tpu.pipeline_mode<synchronous>, transform_indices = @transform_3, window_bounds = array<i64: 3, 256>}, {transform_indices = @transform_4, window_bounds = array<i64: 256, 256>}]} {
    %c0_i32 = arith.constant 0 : i32
    %0 = arith.cmpi eq, %arg1, %c0_i32 : i32
    %1 = arith.extui %0 : i1 to i32
    %c0_i32_0 = arith.constant 0 : i32
    %2 = arith.cmpi ne, %1, %c0_i32_0 : i32
    scf.if %2 {
      %cst_10 = arith.constant 0.000000e+00 : f32
      %13 = vector.broadcast %cst_10 : f32 to vector<256x256xf32>
      %c0_11 = arith.constant 0 : index
      %c0_12 = arith.constant 0 : index
      %14 = vector.load %arg7[%c0_11, %c0_12] : memref<256x256xf32, #tpu.memory_space<vmem>>, vector<256x256xf32>
      tpu.vector_store %arg7[%c0_11, %c0_12], %13 {strides = array<i32>} : memref<256x256xf32, #tpu.memory_space<vmem>>, vector<256x256xf32>,
    } else {
    }
    %c0 = arith.constant 0 : index
    %c0_1 = arith.constant 0 : index
    %3 = vector.load %arg7[%c0, %c0_1] : memref<256x256xf32, #tpu.memory_space<vmem>>, vector<256x256xf32>
    %c0_2 = arith.constant 0 : index
    %c0_3 = arith.constant 0 : index
    %4 = vector.load %arg2[%c0_2, %c0_3] : memref<256x256xf32, #tpu.memory_space<vmem>>, vector<256x256xf32>
    %5 = arith.truncf %4 : vector<256x256xf32> to vector<256x256xbf16>
    %c0_4 = arith.constant 0 : index
    %c0_5 = arith.constant 0 : index
    %6 = vector.load %arg4[%c0_4, %c0_5] : memref<256x256xbf16, #tpu.memory_space<vmem>>, vector<256x256xbf16>
    %cst = arith.constant dense<0.000000e+00> : vector<256x256xf32>
    %7 = tpu.matmul %5, %6, %cst {dimension_numbers = #tpu.dot_dimension_numbers<[1], [0], [0], [1], [0, 0, 1, 1], [], []>} : vector<256x256xbf16>, vector<256x256xbf16>, vector<256x256xf32> -> vector<256x256xf32>
    %8 = arith.addf %3, %7 : vector<256x256xf32>
    %c0_6 = arith.constant 0 : index
    %c0_7 = arith.constant 0 : index
    %9 = vector.load %arg7[%c0_6, %c0_7] : memref<256x256xf32, #tpu.memory_space<vmem>>, vector<256x256xf32>
    tpu.vector_store %arg7[%c0_6, %c0_7], %8 {strides = array<i32>} : memref<256x256xf32, #tpu.memory_space<vmem>>, vector<256x256xf32>,
    %c0_i32_8 = arith.constant 0 : i32
    %10 = arith.cmpi eq, %arg1, %c0_i32_8 : i32
    %11 = arith.extui %10 : i1 to i32
    %c0_i32_9 = arith.constant 0 : i32
    %12 = arith.cmpi ne, %11, %c0_i32_9 : i32
    scf.if %12 {
      %c0_10 = arith.constant 0 : index
      %c0_11 = arith.constant 0 : index
      %13 = vector.load %arg5[%c0_10, %c0_11] : memref<3x256xf32, #tpu.memory_space<vmem>>, vector<3x256xf32>
      %14 = vector.extract_strided_slice %13 {offsets = [0, 0], sizes = [1, 256], strides = [1, 1]} : vector<3x256xf32> to vector<1x256xf32>
      %15 = vector.extract_strided_slice %13 {offsets = [1, 0], sizes = [1, 256], strides = [1, 1]} : vector<3x256xf32> to vector<1x256xf32>
      %16 = vector.extract_strided_slice %13 {offsets = [2, 0], sizes = [1, 256], strides = [1, 1]} : vector<3x256xf32> to vector<1x256xf32>
      %c0_12 = arith.constant 0 : index
      %c0_13 = arith.constant 0 : index
      %17 = vector.load %arg3[%c0_12, %c0_13] : memref<256x256xf32, #tpu.memory_space<vmem>>, vector<256x256xf32>
      %c0_14 = arith.constant 0 : index
      %c0_15 = arith.constant 0 : index
      %18 = vector.load %arg7[%c0_14, %c0_15] : memref<256x256xf32, #tpu.memory_space<vmem>>, vector<256x256xf32>
      %19 = arith.addf %17, %18 : vector<256x256xf32>
      %20 = vector.broadcast %14 : vector<1x256xf32> to vector<256x256xf32>
      %21 = arith.addf %19, %20 : vector<256x256xf32>
      %cst_16 = arith.constant dense<0.000000e+00> : vector<256xf32>
      %22 = vector.multi_reduction <add>, %21, %cst_16 [1] : vector<256x256xf32> to vector<256xf32>
      %23 = vector.shape_cast %22 : vector<256xf32> to vector<256x1xf32>
      %cst_17 = arith.constant 2.560000e+02 : f32
      %24 = vector.broadcast %cst_17 : f32 to vector<256x1xf32>
      %25 = arith.divf %23, %24 : vector<256x1xf32>
      %26 = vector.broadcast %25 : vector<256x1xf32> to vector<256x256xf32>
      %27 = arith.subf %21, %26 : vector<256x256xf32>
      %28 = arith.mulf %27, %27 : vector<256x256xf32>
      %cst_18 = arith.constant dense<0.000000e+00> : vector<256xf32>
      %29 = vector.multi_reduction <add>, %28, %cst_18 [1] : vector<256x256xf32> to vector<256xf32>
      %30 = vector.shape_cast %29 : vector<256xf32> to vector<256x1xf32>
      %cst_19 = arith.constant 2.560000e+02 : f32
      %31 = vector.broadcast %cst_19 : f32 to vector<256x1xf32>
      %32 = arith.divf %30, %31 : vector<256x1xf32>
      %cst_20 = arith.constant 9.99999996E-13 : f32
      %33 = vector.broadcast %cst_20 : f32 to vector<256x1xf32>
      %34 = arith.addf %32, %33 : vector<256x1xf32>
      %35 = math.rsqrt %34 : vector<256x1xf32>
      %36 = vector.broadcast %35 : vector<256x1xf32> to vector<256x256xf32>
      %37 = arith.mulf %27, %36 : vector<256x256xf32>
      %38 = vector.broadcast %15 : vector<1x256xf32> to vector<256x256xf32>
      %39 = arith.mulf %37, %38 : vector<256x256xf32>
      %40 = vector.broadcast %16 : vector<1x256xf32> to vector<256x256xf32>
      %41 = arith.addf %39, %40 : vector<256x256xf32>
      %c0_21 = arith.constant 0 : index
      %c0_22 = arith.constant 0 : index
      %42 = vector.load %arg6[%c0_21, %c0_22] : memref<256x256xf32, #tpu.memory_space<vmem>>, vector<256x256xf32>
      tpu.vector_store %arg6[%c0_21, %c0_22], %41 {strides = array<i32>} : memref<256x256xf32, #tpu.memory_space<vmem>>, vector<256x256xf32>,
    } else {
    }
    return
  }
  func.func @transform_0(%arg0: i32, %arg1: i32) -> (i32, i32) {
    %c0_i32 = arith.constant 0 : i32
    return %arg0, %arg1 : i32, i32
  }
  func.func @transform_1(%arg0: i32, %arg1: i32) -> (i32, i32) {
    %c0_i32 = arith.constant 0 : i32
    %c0_i32_0 = arith.constant 0 : i32
    return %arg0, %c0_i32 : i32, i32
  }
  func.func @transform_2(%arg0: i32, %arg1: i32) -> (i32, i32) {
    %c0_i32 = arith.constant 0 : i32
    %c0_i32_0 = arith.constant 0 : i32
    return %arg1, %c0_i32 : i32, i32
  }
  func.func @transform_3(%arg0: i32, %arg1: i32) -> (i32, i32) {
    %c0_i32 = arith.constant 0 : i32
    %c0_i32_0 = arith.constant 0 : i32
    %c0_i32_1 = arith.constant 0 : i32
    return %c0_i32, %c0_i32_0 : i32, i32
  }
  func.func @transform_4(%arg0: i32, %arg1: i32) -> (i32, i32) {
    %c0_i32 = arith.constant 0 : i32
    %c0_i32_0 = arith.constant 0 : i32
    return %arg0, %c0_i32 : i32, i32
  }
}

</mosaic_0001>

<bundles_post_ra>
// kernel: tpu_custom_call.1
= control target key start
LH: loop header
LB: loop body
LE: loop exit
PB: predicated region body
PF: predicated region fallthrough
CT: control target
= control target key end

     0   :  { %s3989_s0 = inlined_call_operand.hbm [shape: f32[512,256], index: 0, kind: input, shape index: {}]   ;;  %s3990_s1 = inlined_call_operand.hbm [shape: f32[512,256], index: 1, kind: input, shape index: {}]   ;;  %s3991_s2 = inlined_call_operand.hbm [shape: bf16[256,256], index: 2, kind: input, shape index: {}]   ;;  %s3992_s3 = inlined_call_operand.hbm [shape: f32[3,256], index: 3, kind: input, shape index: {}]   ;;  %s3993_s4 = inlined_call_operand.hbm [shape: f32[512,256], index: 4, kind: output, shape index: {}]  }
   0x1   :  { %4038 = sst [smem:[#allocation44_spill]] %s3989_s0 }
   0x2   :  { %4039 = sst [smem:[#allocation45_spill]] %s3991_s2 }
   0x3   :  { %4040 = sst [smem:[#allocation46_spill]] %s3992_s3 }
   0x4   :  { %9 = vsyncpa [#allocation4], 0 }
   0x5   :  { %11 = vsyncpa [#allocation4 + $0x1], 0 }
   0x6   :  { %12 = vsyncpa [#allocation7], 0 }
   0x7   :  { %14 = vsyncpa [#allocation7 + $0x1], 0 }
   0x8   :  { %15 = vsyncpa [#allocation10], 0 }
   0x9   :  { %16 = vsyncpa [#allocation5], 0 }
   0xa   :  { %18 = vsyncpa [#allocation5 + $0x1], 0  ;;  %s2759_s15 = smov 0   ;;  %s2761_s16 = smov 0  }
   0xb   :  { %s2763_s17 = smov 0   ;;  %s2765_s18 = smov 0  }
   0xc   :  { %s2767_s19 = smov 0   ;;  %s2769_s20 = smov 0  }
   0xd LB: > { %s2790_s21 = sadd.s32 4294967295, %s2721_s20   ;;  %s2220_s22 = sadd.s32 4294967294, %s2721_s20   ;;  %s2721_s20 = sphi %s2769_s20, %s24_s20   ;;  %s2717_s19 = sphi %s2767_s19, %s4151_s19   ;;  %s2713_s18 = sphi %s2765_s18, %s4150_s18   ;;  %s2709_s17 = sphi %s2763_s17, %s4149_s17   ;;  %s2705_s16 = sphi %s2761_s16, %s4148_s16   ;;  %s2701_s15 = sphi %s2759_s15, %s4147_s15  }
   0xe   : > { %p58_p0 = scmp.ne.s32.totalorder %s2705_s16, %s2701_s15  ;;  %p3994_p1 = scmp.eq.s32.totalorder %s2790_s21, 0 }
   0xf   : > { %p161_p3 = scmp.eq.s32.totalorder %s2220_s22, 1  ;;  %p2221_p5 = scmp.ge.s32.totalorder %s2721_s20, 1 }
  0x10   : > { %p2799_p4 = por %p3994_p1, %p58_p0  ;;  %p168_p7 = scmp.lt.s32.totalorder %s2721_s20, 3 }
  0x11   : > { %p2804_p6 = por %p161_p3, %p58_p0  ;;  %s2723_s26 = smov [#allocation8]  }
  0x12   : > { %p2809_p8 = pnand %p2221_p5, %p168_p7  ;;  %s184_s27 = sshll.u32 %s2723_s26, 4  ;;  %s185_s27 = int_to_ptr.vmem [resolvable:$true] %s184_s27 }
  0x13   : > { %s4042_s24 = scalar_select %p2804_p6, 1, 0 }
  0x14   : > { %p2329_p9 = pneg %p2809_p8  ;;  %s2724_s29 = smov [#allocation9]  }
  0x15   : > { %s198_s30 = sshll.u32 %s2724_s29, 4  ;;  %s2532_s5 = scalar_lea.vmem %s185_s27, 4096  ;;  %s199_s30 = int_to_ptr.vmem [resolvable:$true] %s198_s30 }
  0x16   : > { %p2818_p11 = pnand %p2329_p9, %p3994_p1  ;;  %p2533_p13 = scmp.ne.s32.totalorder %s185_s27, %s2532_s5 }
  0x17   : > { %p2540_p5 = scmp.lt.s32.totalorder %s185_s27, %s185_s27  ;;  %p2541_p7 = scmp.lt.s32.totalorder %s2532_s5, %s2532_s5 }
  0x18   : > { %p2523_p12 = pneg %p2818_p11 }
  0x19   : > { %p2542_p10 = por %p2541_p7, %p2540_p5 }
  0x1a   : > { %p2535_p0 = pnand %p2533_p13, %p2523_p12 }
  0x1c   : > { %p2536_p3 = pneg %p2535_p0 }
  0x1e   : > { %p2543_p9 = pnand %p2542_p10, %p2536_p3 }
  0x20   : > { %2546 = shalt.err (!%p2543_p9)
}
  0x21   : > { %s2725_s6 = smov 128   ;;  %s2726_s7 = smov 8  }
  0x22   : > { %s4045_s2 = sld [smem:[#allocation45_spill]]  ;;  %s2558_s10 = scalar_lea.vmem %s199_s30, 128 }
  0x23   : > { %p2559_p1 = scmp.ne.s32.totalorder %s199_s30, %s2558_s10  ;;  %p2566_p2 = scmp.lt.s32.totalorder %s199_s30, %s199_s30 }
  0x24   : > { %p2567_p6 = scmp.lt.s32.totalorder %s2558_s10, %s2558_s10 }
  0x25   : > { %p2561_p13 = pnand %p2559_p1, %p2523_p12 }
  0x26   : > { %p2568_p5 = por %p2567_p6, %p2566_p2 }
  0x27   : > { %p2562_p0 = pneg %p2561_p13 }
  0x28   : > { %2332 = dma.hbm_to_vmem [thread:$0]  (!%p2818_p11), %s4045_s2, 4096, %s185_s27, [#allocation7], %s2725_s6, %s2725_s6, %s2726_s7  }
  0x29   : > { %p2569_p10 = pnand %p2568_p5, %p2562_p0 }
  0x2b   : > { %2572 = shalt.err (!%p2569_p10)
}
  0x2c   : > { %s4046_s3 = sld [smem:[#allocation46_spill]]  ;;  %s36_s13 = sadd.s32 1, %s2717_s19 }
  0x2d   : > { %s45_s14 = sadd.s32 1, %s2709_s17  ;;  %p38_p1 = scmp.ge.s32.totalorder %s36_s13, 2 }
  0x2e   : > { %p52_p2 = scmp.ne.s32.totalorder %s2709_s17, %s2705_s16  ;;  %p53_p6 = scmp.eq.s32.totalorder %s2721_s20, 0 }
  0x2f   : > { %p2349_p12 = scmp.lt.s32.totalorder %s2721_s20, 2  ;;  %s4153_s13 = smov (%p38_p1, %s36_s13), 0 }
  0x30   : > { %4047 = sst [smem:[#allocation17_spill]] %s4153_s13  ;;  %p54_p3 = por %p53_p6, %p52_p2 }
  0x31   : > { %p4048_p7 = scmp.eq.s32.totalorder %s2790_s21, 1  ;;  %s40_s26 = ssub.s32 %s2717_s19, %s4153_s13 }
  0x32   : > { %2335 = dma.hbm_to_vmem [thread:$0]  (!%p2818_p11), %s4046_s3, 128, %s199_s30, [#allocation10]  }
  0x33   : > { %p2850_p9 = por %p4048_p7, %p52_p2  ;;  %s209_s27 = sand.u32 1, %s2709_s17  }
  0x34   : > { %p43_p11 = scmp.eq.s32.totalorder %s40_s26, 0  ;;  %s2857_s28 = sshll.u32 %s209_s27, 9 }
  0x35   : > { %s2278_s29 = sshll.u32 %s2717_s19, 13  ;;  %s4051_s0 = sld [smem:[#allocation44_spill]] }
  0x36   : > { %s2861_s30 = scalar_select %p43_p11, %s2709_s17, %s45_s14  }
  0x37   : > { %s213_s8 = scalar_lea.vmem [#allocation3], %s2857_s28  ;;  %p2871_p13 = pnand %p2349_p12, %p54_p3 }
  0x38   : > { %4050 = sst [smem:[#allocation18_spill]] %s2861_s30  ;;  %s223_s9 = sshll.u32 %s213_s8, 4  ;;  %s224_s9 = int_to_ptr.vmem [resolvable:$true] %s223_s9 }
  0x39   : > { %s210_s11 = scalar_lea.sflag [#allocation4], %s209_s27  ;;  %p2575_p0 = pneg %p2871_p13 }
  0x3a   : > { %s2586_s12 = scalar_lea.vmem %s224_s9, 8192  ;;  %s2727_s14 = smov [#allocation3]  }
  0x3b   : > { %s222_s7 = scalar_lea.hbm %s4051_s0, %s2278_s29  ;;  %p2587_p5 = scmp.ne.s32.totalorder %s224_s9, %s2586_s12 }
  0x3c   : > { %s2591_s26 = sshll.u32 %s2727_s14, 4  ;;  %s2592_s26 = int_to_ptr.vmem [resolvable:$false] %s2591_s26 }
  0x3d   : > { %p2589_p10 = pnand %p2587_p5, %p2575_p0  ;;  %s2593_s5 = scalar_lea.vmem %s2592_s26, 16384 }
  0x3e   : > { %p2594_p2 = scmp.lt.s32.totalorder %s224_s9, %s2592_s26  ;;  %p2595_p6 = scmp.lt.s32.totalorder %s2593_s5, %s2586_s12 }
  0x3f   : > { %p2590_p1 = pneg %p2589_p10 }
  0x40   : > { %p2596_p12 = por %p2595_p6, %p2594_p2 }
  0x42   : > { %p2597_p3 = pnand %p2596_p12, %p2590_p1 }
  0x44   : > { %2600 = shalt.err (!%p2597_p3)
}
  0x45   : > { %s2728_s6 = smov 256   ;;  %s2729_s27 = smov 16  }
  0x46   : > { %2339 = dma.hbm_to_vmem [thread:$0]  (!%p2871_p13), %s222_s7, 8192, %s224_s9, %s210_s11, %s2728_s6, %s2728_s6, %s2729_s27  }
  0x47   : > { %s244_s14 = scalar_lea.hbm %s3990_s1, %s2278_s29  ;;  %s237_s2 = scalar_lea.vmem [#allocation6], %s2857_s28 }
  0x48   : > { %s245_s26 = sshll.u32 %s237_s2, 4  ;;  %s233_s12 = sand.u32 1, %s2721_s20   ;;  %s246_s26 = int_to_ptr.vmem [resolvable:$true] %s245_s26 }
  0x49   : > { %s234_s5 = scalar_lea.sflag [#allocation7], %s233_s12  ;;  %s2614_s3 = scalar_lea.vmem %s246_s26, 8192 }
  0x4a   : > { %p2615_p7 = scmp.ne.s32.totalorder %s246_s26, %s2614_s3  ;;  %s2730_s13 = smov [#allocation6]  }
  0x4b   : > { %s2619_s30 = sshll.u32 %s2730_s13, 4  ;;  %s2620_s30 = int_to_ptr.vmem [resolvable:$false] %s2619_s30 }
  0x4c   : > { %p2617_p11 = pnand %p2615_p7, %p2575_p0  ;;  %s2621_s7 = scalar_lea.vmem %s2620_s30, 16384 }
  0x4d   : > { %p2622_p10 = scmp.lt.s32.totalorder %s246_s26, %s2620_s30  ;;  %p2623_p1 = scmp.lt.s32.totalorder %s2621_s7, %s2614_s3 }
  0x4e   : > { %p2618_p5 = pneg %p2617_p11 }
  0x4f   : > { %p2624_p2 = por %p2623_p1, %p2622_p10 }
  0x51   : > { %p2625_p6 = pnand %p2624_p2, %p2618_p5 }
  0x53   : > { %2628 = shalt.err (!%p2625_p6)
}
  0x54   : > { %2342 = dma.hbm_to_vmem [thread:$0]  (!%p2871_p13), %s244_s14, 8192, %s246_s26, %s234_s5, %s2728_s6, %s2728_s6, %s2729_s27  }
  0x55   : > { %257 = sbr.rel (%p2809_p8) target bundleno = 765 (0x2fd), region = 36 }
  0x5a   : > { %s2897_s0 = sand.u32 1, %s2705_s16  }
  0x5b   : > { %s2900_s2 = sshll.u32 %s2897_s0, 9  ;;  %s260_s13 = scalar_lea.sflag [#allocation4], %s2897_s0 }
  0x5c   : > { %s2904_s3 = scalar_lea.vmem [#allocation3], %s2900_s2 }
  0x5d   : > { %2680 = dma.done.wait (%p2799_p4), %s260_s13, 8192  }
  0x5e   : > { %2682 = vsyncadd (%p2799_p4), %s260_s13, 4294959104  ;;  %s268_s25 = sand.u32 1, %s2790_s21   ;;  %s2912_s29 = scalar_lea.vmem [#allocation6], %s2900_s2 }
  0x5f   : > { %s269_s28 = scalar_lea.sflag [#allocation7], %s268_s25 }
  0x60   : > { %2684 = dma.done.wait (%p2799_p4), %s269_s28, 8192  }
  0x61   : > { %2686 = vsyncadd (%p2799_p4), %s269_s28, 4294959104  ;;  %p4053_p8 = scmp.eq.s32.totalorder %s2790_s21, 0 }
  0x63   : > { %2688 = dma.done.wait (%p4053_p8), [#allocation7], 4096   ;;  %p4054_p13 = pmov %p4053_p8 }
  0x64   : > { %p4055_p0 = pmov %p4053_p8 }
  0x65   : > { %2690 = vsyncadd (%p4054_p13), [#allocation7], 4294963200 }
  0x66   : > { %2692 = dma.done.wait (%p4055_p0), [#allocation10], 128   ;;  %p4056_p12 = pmov %p4055_p0 }
  0x67   : > { %v2409_v0 = vld [vmem:[#allocation8 + $0x74] ss:$8 sps:$4 sm:$0xff]   ;;  %v2411_v1 = vld [vmem:[#allocation8 + $0x70] ss:$8 sps:$4 sm:$0xff]   ;;  %v2412_v2 = vld [vmem:[#allocation8 + $0x64] ss:$8 sps:$4 sm:$0xff]  }
  0x68   : > { %2694 = vsyncadd (%p4056_p12), [#allocation10], 4294967168  ;;  %735 = vmatprep.subr.bf16.mxu0 %v2409_v0  ;;  %2283 = vmatprep.subr.bf16.mxu1 %v2409_v0  ;;  %v2414_v3 = vld [vmem:[#allocation8 + $0x60] ss:$8 sps:$4 sm:$0xff]   ;;  %v2415_v4 = vld [vmem:[#allocation8 + $0x54] ss:$8 sps:$4 sm:$0xff]  }
  0x69   : > { %736 = vmatpush1.bf16.msra.mxu0 %v2411_v1  ;;  %2299 = vmatpush1.bf16.msra.mxu1 %v2411_v1  ;;  %v2417_v5 = vld [vmem:[#allocation8 + $0x50] ss:$8 sps:$4 sm:$0xff]   ;;  %v2418_v6 = vld [vmem:[#allocation8 + $0x44] ss:$8 sps:$4 sm:$0xff]   ;;  %v2420_v7 = vld [vmem:[#allocation8 + $0x40] ss:$8 sps:$4 sm:$0xff]  }
  0x6a   : > { %737 = vmatprep.subr.bf16.mxu0 %v2412_v2  ;;  %2284 = vmatprep.subr.bf16.mxu1 %v2412_v2  ;;  %v2421_v8 = vld [vmem:[#allocation8 + $0x34] ss:$8 sps:$4 sm:$0xff]   ;;  %v2423_v9 = vld [vmem:[#allocation8 + $0x30] ss:$8 sps:$4 sm:$0xff]   ;;  %v2424_v10 = vld [vmem:[#allocation8 + $0x24] ss:$8 sps:$4 sm:$0xff]  }
  0x6b   : > { %v2426_v11 = vld [vmem:[#allocation8 + $0x20] ss:$8 sps:$4 sm:$0xff]   ;;  %v2427_v12 = vld [vmem:[#allocation8 + $0x14] ss:$8 sps:$4 sm:$0xff]   ;;  %v2429_v18 = vld [vmem:[#allocation8 + $0x10] ss:$8 sps:$4 sm:$0xff]  }
  0x6c   : > { %v448_v13 = vld [vmem:[%s2904_s3 + $0x8] sm:$0xff]  ;;  %v450_v14 = vld [vmem:[%s2904_s3 + $0x18] sm:$0xff]  ;;  %v447_v38 = vld [vmem:[%s2904_s3] sm:$0xff]  ;;  %s3681_s21 = scalar_lea.vmem [#allocation11], %s2900_s2  ;;  %s2282_s23 = sshll.u32 %s2713_s18, 13 }
  0x6d   : > { %738 = vmatpush1.bf16.msra.mxu0 %v2414_v3  ;;  %2300 = vmatpush1.bf16.msra.mxu1 %v2414_v3  ;;  %v512_v15 = vpack.c.bf16 %v450_v14, %v448_v13  ;;  %v480_v16 = vld [vmem:[%s2904_s3 + $0x108] sm:$0xff]  ;;  %v482_v17 = vld [vmem:[%s2904_s3 + $0x118] sm:$0xff]  ;;  %v449_v39 = vld [vmem:[%s2904_s3 + $0x10] sm:$0xff]  ;;  %s2091_s30 = sshll.u32 %s3681_s21, 4  ;;  %s3933_s10 = scalar_lea.hbm %s3993_s4, %s2282_s23  ;;  %s3935_s30 = int_to_ptr.vmem [resolvable:$true] %s2091_s30 }
  0x6e   : > { %739 = vmatprep.subr.bf16.mxu0 %v2415_v4  ;;  %2285 = vmatprep.subr.bf16.mxu1 %v2415_v4  ;;  %v528_v19 = vpack.c.bf16 %v482_v17, %v480_v16  ;;  %v2430_v20 = vld [vmem:[#allocation8 + $0x4] ss:$8 sps:$4 sm:$0xff]   ;;  %v2432_v21 = vld [vmem:[#allocation8] ss:$8 sps:$4 sm:$0xff]   ;;  %v2433_v22 = vld [vmem:[#allocation8 + $0xf4] ss:$8 sps:$4 sm:$0xff]   ;;  %v511_v46 = vpack.c.bf16 %v449_v39, %v447_v38 }
  0x6f   : > { %767 = vmatprep.mubr.bf16.mxu0 %v512_v15  ;;  %v2435_v23 = vld [vmem:[#allocation8 + $0xf0] ss:$8 sps:$4 sm:$0xff]   ;;  %v2436_v24 = vld [vmem:[#allocation8 + $0xe4] ss:$8 sps:$4 sm:$0xff]   ;;  %v2438_v25 = vld [vmem:[#allocation8 + $0xe0] ss:$8 sps:$4 sm:$0xff]  }
  0x70   : > { %847 = vmatprep.mubr.bf16.mxu1 %v528_v19  ;;  %v2439_v26 = vld [vmem:[#allocation8 + $0xd4] ss:$8 sps:$4 sm:$0xff]   ;;  %v2441_v27 = vld [vmem:[#allocation8 + $0xd0] ss:$8 sps:$4 sm:$0xff]   ;;  %v2442_v28 = vld [vmem:[#allocation8 + $0xc4] ss:$8 sps:$4 sm:$0xff]  }
  0x71   : > { %740 = vmatpush1.bf16.msra.mxu0 %v2417_v5  ;;  %2301 = vmatpush1.bf16.msra.mxu1 %v2417_v5  ;;  %v2444_v29 = vld [vmem:[#allocation8 + $0xc0] ss:$8 sps:$4 sm:$0xff]   ;;  %v2445_v30 = vld [vmem:[#allocation8 + $0xb4] ss:$8 sps:$4 sm:$0xff]   ;;  %v2447_v31 = vld [vmem:[#allocation8 + $0xb0] ss:$8 sps:$4 sm:$0xff]  }
  0x72   : > { %741 = vmatprep.subr.bf16.mxu0 %v2418_v6  ;;  %2286 = vmatprep.subr.bf16.mxu1 %v2418_v6  ;;  %v2448_v32 = vld [vmem:[#allocation8 + $0xa4] ss:$8 sps:$4 sm:$0xff]   ;;  %v2450_v33 = vld [vmem:[#allocation8 + $0xa0] ss:$8 sps:$4 sm:$0xff]   ;;  %v2451_v34 = vld [vmem:[#allocation8 + $0x94] ss:$8 sps:$4 sm:$0xff]  }
  0x73   : > { %v2453_v35 = vld [vmem:[#allocation8 + $0x90] ss:$8 sps:$4 sm:$0xff]   ;;  %v2454_v36 = vld [vmem:[#allocation8 + $0x84] ss:$8 sps:$4 sm:$0xff]   ;;  %v2456_v37 = vld [vmem:[#allocation8 + $0x80] ss:$8 sps:$4 sm:$0xff]  }
  0x74   : > { %v479_v40 = vld [vmem:[%s2904_s3 + $0x100] sm:$0xff]  ;;  %v481_v41 = vld [vmem:[%s2904_s3 + $0x110] sm:$0xff]  ;;  %v452_v42 = vld [vmem:[%s2904_s3 + $0x28] sm:$0xff]  ;;  %s2077_s11 = scalar_lea.sflag [#allocation5], %s2897_s0  ;;  %s2629_s6 = scalar_lea.vmem %s3935_s30, 8192 }
  0x75   : > { %742 = vmatpush1.bf16.msra.mxu0 %v2420_v7  ;;  %2302 = vmatpush1.bf16.msra.mxu1 %v2420_v7  ;;  %v454_v43 = vld [vmem:[%s2904_s3 + $0x38] sm:$0xff]  ;;  %v484_v44 = vld [vmem:[%s2904_s3 + $0x128] sm:$0xff]  ;;  %v527_v47 = vpack.c.bf16 %v481_v41, %v479_v40  ;;  %v451_v50 = vld [vmem:[%s2904_s3 + $0x20] sm:$0xff]  ;;  %p2630_p4 = scmp.ne.s32.totalorder %s3935_s30, %s2629_s6  ;;  %s2731_s27 = smov [#allocation11]  }
  0x76   : > { %743 = vmatprep.subr.bf16.mxu0 %v2421_v8  ;;  %2287 = vmatprep.subr.bf16.mxu1 %v2421_v8  ;;  %v486_v45 = vld [vmem:[%s2904_s3 + $0x138] sm:$0xff]  ;;  %v514_v48 = vpack.c.bf16 %v454_v43, %v452_v42  ;;  %v453_v51 = vld [vmem:[%s2904_s3 + $0x30] sm:$0xff]  ;;  %v483_v52 = vld [vmem:[%s2904_s3 + $0x120] sm:$0xff]  ;;  %s2633_s8 = sshll.u32 %s2731_s27, 4  ;;  %s2634_s8 = int_to_ptr.vmem [resolvable:$false] %s2633_s8 }
  0x77   : > { %v530_v49 = vpack.c.bf16 %v486_v45, %v484_v44  ;;  %v485_v53 = vld [vmem:[%s2904_s3 + $0x130] sm:$0xff]  ;;  %v456_v54 = vld [vmem:[%s2904_s3 + $0x48] sm:$0xff]  ;;  %v458_v55 = vld [vmem:[%s2904_s3 + $0x58] sm:$0xff]  ;;  %v513_v58 = vpack.c.bf16 %v453_v51, %v451_v50  ;;  %p2631_p3 = pnand %p2630_p4, %p2850_p9  ;;  %s2635_s14 = scalar_lea.vmem %s2634_s8, 16384 }
  0x78   : > { %v488_v56 = vld [vmem:[%s2904_s3 + $0x148] sm:$0xff]  ;;  %v490_v57 = vld [vmem:[%s2904_s3 + $0x158] sm:$0xff]  ;;  %v529_v59 = vpack.c.bf16 %v485_v53, %v483_v52  ;;  %v516_v60 = vpack.c.bf16 %v458_v55, %v456_v54  ;;  %v455_v62 = vld [vmem:[%s2904_s3 + $0x40] sm:$0xff]  ;;  %p2636_p11 = scmp.lt.s32.totalorder %s3935_s30, %s2634_s8  ;;  %p2637_p5 = scmp.lt.s32.totalorder %s2635_s14, %s2629_s6 }
  0x79   : > { %744 = vmatpush1.bf16.msra.mxu0 %v2423_v9  ;;  %2303 = vmatpush1.bf16.msra.mxu1 %v2423_v9  ;;  %v532_v61 = vpack.c.bf16 %v490_v57, %v488_v56  ;;  %v457_v63 = vld [vmem:[%s2904_s3 + $0x50] sm:$0xff]  ;;  %v487_v0 = vld [vmem:[%s2904_s3 + $0x140] sm:$0xff]  ;;  %v460_v2 = vld [vmem:[%s2904_s3 + $0x68] sm:$0xff]  ;;  %p2632_p7 = pneg %p2631_p3 }
  0x7a   : > { %745 = vmatprep.subr.bf16.mxu0 %v2424_v10  ;;  %2288 = vmatprep.subr.bf16.mxu1 %v2424_v10  ;;  %v489_v1 = vld [vmem:[%s2904_s3 + $0x150] sm:$0xff]  ;;  %v462_v3 = vld [vmem:[%s2904_s3 + $0x78] sm:$0xff]  ;;  %v492_v4 = vld [vmem:[%s2904_s3 + $0x168] sm:$0xff]  ;;  %v515_v6 = vpack.c.bf16 %v457_v63, %v455_v62  ;;  %p2638_p10 = por %p2637_p5, %p2636_p11 }
  0x7b   : > { %v494_v5 = vld [vmem:[%s2904_s3 + $0x178] sm:$0xff]  ;;  %v531_v7 = vpack.c.bf16 %v489_v1, %v487_v0  ;;  %v518_v8 = vpack.c.bf16 %v462_v3, %v460_v2  ;;  %v459_v10 = vld [vmem:[%s2904_s3 + $0x60] sm:$0xff]  ;;  %v493_v13 = vld [vmem:[%s2904_s3 + $0x170] sm:$0xff]  ;;  %v1253_v0 = vlaneseq }
  0x7c   : > { %v534_v9 = vpack.c.bf16 %v494_v5, %v492_v4  ;;  %v464_v14 = vld [vmem:[%s2904_s3 + $0x88] sm:$0xff]  ;;  %v466_v15 = vld [vmem:[%s2904_s3 + $0x98] sm:$0xff]  ;;  %p2639_p1 = pnand %p2638_p10, %p2632_p7 }
  0x7d   : > { %746 = vmatpush1.bf16.msra.mxu0 %v2426_v11  ;;  %2304 = vmatpush1.bf16.msra.mxu1 %v2426_v11  ;;  %v461_v11 = vld [vmem:[%s2904_s3 + $0x70] sm:$0xff]  ;;  %v496_v16 = vld [vmem:[%s2904_s3 + $0x188] sm:$0xff]  ;;  %v498_v17 = vld [vmem:[%s2904_s3 + $0x198] sm:$0xff]  ;;  %v1254_v1 = vshrl.u32 %v1253_v0, 7 }
  0x7e   : > { %747 = vmatprep.subr.bf16.mxu0 %v2427_v12  ;;  %2289 = vmatprep.subr.bf16.mxu1 %v2427_v12  ;;  %v491_v12 = vld [vmem:[%s2904_s3 + $0x160] sm:$0xff]  ;;  %v472_v38 = vld [vmem:[%s2904_s3 + $0xc8] sm:$0xff]  ;;  %v474_v39 = vld [vmem:[%s2904_s3 + $0xd8] sm:$0xff] }
  0x7f   : > { %v533_v19 = vpack.c.bf16 %v493_v13, %v491_v12  ;;  %v504_v40 = vld [vmem:[%s2904_s3 + $0x1c8] sm:$0xff]  ;;  %v506_v41 = vld [vmem:[%s2904_s3 + $0x1d8] sm:$0xff]  ;;  %v524_v44 = vpack.c.bf16 %v474_v39, %v472_v38  ;;  %v2990_v2 = vsub.s32 1, %v1254_v1  ;;  %v1854_v3 = vsub.s32 5, %v1254_v1 }
  0x80   : > { %v540_v45 = vpack.c.bf16 %v506_v41, %v504_v40  ;;  %v476_v50 = vld [vmem:[%s2904_s3 + $0xe8] sm:$0xff]  ;;  %v478_v51 = vld [vmem:[%s2904_s3 + $0xf8] sm:$0xff]  ;;  %v2992_v4 = vsub.s32 2, %v1254_v1  ;;  %v1936_v5 = vsub.s32 6, %v1254_v1  ;;  %v1259_v12 = vsub.s32 4, %v1254_v1  ;;  %v1064_v41 = vld [vmem:[%s2912_s29 + $0x20] sm:$0xff] }
  0x81   : > { %748 = vmatpush1.bf16.msra.mxu0 %v2429_v18  ;;  %2305 = vmatpush1.bf16.msra.mxu1 %v2429_v18  ;;  %v517_v18 = vpack.c.bf16 %v461_v11, %v459_v10  ;;  %v508_v52 = vld [vmem:[%s2904_s3 + $0x1e8] sm:$0xff]  ;;  %v510_v53 = vld [vmem:[%s2904_s3 + $0x1f8] sm:$0xff]  ;;  %v526_v56 = vpack.c.bf16 %v478_v51, %v476_v50  ;;  %v1255_v11 = vsub.s32 0, %v1254_v1 }
  0x82   : > { %749 = vmatprep.subr.bf16.mxu0 %v2430_v20  ;;  %2290 = vmatprep.subr.bf16.mxu1 %v2430_v20  ;;  %v520_v20 = vpack.c.bf16 %v466_v15, %v464_v14  ;;  %v542_v57 = vpack.c.bf16 %v510_v53, %v508_v52  ;;  %v1060_v15 = vld [vmem:[%s2912_s29] sm:$0xff]  ;;  %v1097_v50 = vld [vmem:[%s2912_s29 + $0x128] sm:$0xff] }
  0x85   : > { %750 = vmatpush1.bf16.msra.mxu0 %v2432_v21  ;;  %2306 = vmatpush1.bf16.msra.mxu1 %v2432_v21  ;;  %v536_v21 = vpack.c.bf16 %v498_v17, %v496_v16  ;;  %v1092_v16 = vld [vmem:[%s2912_s29 + $0x100] sm:$0xff] }
  0x86   : > { %751 = vmatprep.subr.bf16.mxu0 %v2433_v22  ;;  %2291 = vmatprep.subr.bf16.mxu1 %v2433_v22  ;;  %v463_v22 = vld [vmem:[%s2904_s3 + $0x80] sm:$0xff] }
  0x89   : > { %752 = vmatpush2.bf16.msra.mxu0 %v2435_v23  ;;  %2307 = vmatpush2.bf16.msra.mxu1 %v2435_v23  ;;  %v465_v23 = vld [vmem:[%s2904_s3 + $0x90] sm:$0xff] }
  0x8a   : > { %753 = vmatprep.subr.bf16.mxu0 %v2436_v24  ;;  %2292 = vmatprep.subr.bf16.mxu1 %v2436_v24  ;;  %v495_v24 = vld [vmem:[%s2904_s3 + $0x180] sm:$0xff] }
  0x8d   : > { %754 = vmatpush2.bf16.msra.mxu0 %v2438_v25  ;;  %2308 = vmatpush2.bf16.msra.mxu1 %v2438_v25  ;;  %v497_v25 = vld [vmem:[%s2904_s3 + $0x190] sm:$0xff] }
  0x8e   : > { %755 = vmatprep.subr.bf16.mxu0 %v2439_v26  ;;  %2293 = vmatprep.subr.bf16.mxu1 %v2439_v26  ;;  %v468_v26 = vld [vmem:[%s2904_s3 + $0xa8] sm:$0xff] }
  0x91   : > { %756 = vmatpush2.bf16.msra.mxu0 %v2441_v27  ;;  %2309 = vmatpush2.bf16.msra.mxu1 %v2441_v27  ;;  %v470_v27 = vld [vmem:[%s2904_s3 + $0xb8] sm:$0xff] }
  0x92   : > { %757 = vmatprep.subr.bf16.mxu0 %v2442_v28  ;;  %2294 = vmatprep.subr.bf16.mxu1 %v2442_v28  ;;  %v500_v28 = vld [vmem:[%s2904_s3 + $0x1a8] sm:$0xff] }
  0x95   : > { %758 = vmatpush2.bf16.msra.mxu0 %v2444_v29  ;;  %2310 = vmatpush2.bf16.msra.mxu1 %v2444_v29  ;;  %v502_v29 = vld [vmem:[%s2904_s3 + $0x1b8] sm:$0xff] }
  0x96   : > { %759 = vmatprep.subr.bf16.mxu0 %v2445_v30  ;;  %2295 = vmatprep.subr.bf16.mxu1 %v2445_v30  ;;  %v519_v30 = vpack.c.bf16 %v465_v23, %v463_v22 }
  0x99   : > { %760 = vmatpush2.bf16.msra.mxu0 %v2447_v31  ;;  %2311 = vmatpush2.bf16.msra.mxu1 %v2447_v31  ;;  %v535_v31 = vpack.c.bf16 %v497_v25, %v495_v24 }
  0x9a   : > { %761 = vmatprep.subr.bf16.mxu0 %v2448_v32  ;;  %2296 = vmatprep.subr.bf16.mxu1 %v2448_v32  ;;  %v522_v32 = vpack.c.bf16 %v470_v27, %v468_v26 }
  0x9d   : > { %762 = vmatpush2.bf16.msra.mxu0 %v2450_v33  ;;  %2312 = vmatpush2.bf16.msra.mxu1 %v2450_v33  ;;  %v538_v33 = vpack.c.bf16 %v502_v29, %v500_v28  ;;  %v1094_v29 = vld [vmem:[%s2912_s29 + $0x110] sm:$0xff] }
  0x9e   : > { %763 = vmatprep.subr.bf16.mxu0 %v2451_v34  ;;  %2297 = vmatprep.subr.bf16.mxu1 %v2451_v34  ;;  %v467_v34 = vld [vmem:[%s2904_s3 + $0xa0] sm:$0xff] }
  0xa1   : > { %764 = vmatpush2.bf16.msra.mxu0 %v2453_v35  ;;  %2313 = vmatpush2.bf16.msra.mxu1 %v2453_v35  ;;  %v469_v35 = vld [vmem:[%s2904_s3 + $0xb0] sm:$0xff] }
  0xa2   : > { %765 = vmatprep.subr.bf16.mxu0 %v2454_v36  ;;  %2298 = vmatprep.subr.bf16.mxu1 %v2454_v36  ;;  %v499_v36 = vld [vmem:[%s2904_s3 + $0x1a0] sm:$0xff]  ;;  %v521_v42 = vpack.c.bf16 %v469_v35, %v467_v34 }
  0xa5   : > { %766 = vmatpush2.bf16.msra.mxu0 %v2456_v37  ;;  %2314 = vmatpush2.bf16.msra.mxu1 %v2456_v37  ;;  %v501_v37 = vld [vmem:[%s2904_s3 + $0x1b0] sm:$0xff] }
  0xa6   : > { %v537_v43 = vpack.c.bf16 %v501_v37, %v499_v36  ;;  %v1062_v37 = vld [vmem:[%s2912_s29 + $0x10] sm:$0xff] }
  0xa8   : > { %768 = vmatmul.mubr.bf16.vlgmr.msra.gmra.mxu0 %v511_v46  ;;  %848 = vmatmul.mubr.bf16.vlgmr.msra.gmra.mxu1 %v527_v47  ;;  %v471_v46 = vld [vmem:[%s2904_s3 + $0xc0] sm:$0xff]  ;;  %v473_v47 = vld [vmem:[%s2904_s3 + $0xd0] sm:$0xff] }
  0xa9   : > { %777 = vmatprep.mubr.bf16.mxu0 %v514_v48  ;;  %857 = vmatprep.mubr.bf16.mxu1 %v530_v49  ;;  %v503_v48 = vld [vmem:[%s2904_s3 + $0x1c0] sm:$0xff]  ;;  %v505_v49 = vld [vmem:[%s2904_s3 + $0x1d0] sm:$0xff]  ;;  %v523_v54 = vpack.c.bf16 %v473_v47, %v471_v46 }
  0xaa   : > { %v539_v55 = vpack.c.bf16 %v505_v49, %v503_v48  ;;  %v1065_v48 = vld [vmem:[%s2912_s29 + $0x28] sm:$0xff] }
  0xb0   : > { %778 = vmatmul.mubr.bf16.gmra.mxu0 %v513_v58  ;;  %858 = vmatmul.mubr.bf16.gmra.mxu1 %v529_v59  ;;  %v475_v58 = vld [vmem:[%s2904_s3 + $0xe0] sm:$0xff]  ;;  %v477_v59 = vld [vmem:[%s2904_s3 + $0xf0] sm:$0xff] }
  0xb1   : > { %787 = vmatprep.mubr.bf16.mxu0 %v516_v60  ;;  %867 = vmatprep.mubr.bf16.mxu1 %v532_v61  ;;  %v507_v60 = vld [vmem:[%s2904_s3 + $0x1e0] sm:$0xff]  ;;  %v509_v61 = vld [vmem:[%s2904_s3 + $0x1f0] sm:$0xff]  ;;  %v525_v62 = vpack.c.bf16 %v477_v59, %v475_v58 }
  0xb2   : > { %v541_v63 = vpack.c.bf16 %v509_v61, %v507_v60  ;;  %v1066_v60 = vld [vmem:[%s2912_s29 + $0x30] sm:$0xff] }
  0xb8   : > { %788 = vmatmul.mubr.bf16.gmra.mxu0 %v515_v6  ;;  %868 = vmatmul.mubr.bf16.gmra.mxu1 %v531_v7  ;;  %v2994_v6 = vld [vmem:[#allocation9] sm:$0x77]  ;;  %v1082_v7 = vld [vmem:[%s2912_s29 + $0xb0] sm:$0xff] }
  0xb9   : > { %797 = vmatprep.mubr.bf16.mxu0 %v518_v8  ;;  %877 = vmatprep.mubr.bf16.mxu1 %v534_v9  ;;  %v2999_v8 = vrot.slane %v2994_v6, %v1854_v3  ;;  %v3004_v10 = vrot.slane %v2994_v6, %v1936_v5  ;;  %v1256_v13 = vrot.slane %v2994_v6, %v1255_v11  ;;  %v1067_v3 = vld [vmem:[%s2912_s29 + $0x38] sm:$0xff]  ;;  %v1113_v9 = vld [vmem:[%s2912_s29 + $0x1a8] sm:$0xff] }
  0xba   : > { %v1260_v14 = vrot.slane %v2994_v6, %v1259_v12 }
  0xbb   : > { %v3012_v22 = vrot.slane %v1256_v13, %v1255_v11 }
  0xbc   : > { %v3014_v23 = vrot.slane %v1260_v14, %v1255_v11 }
  0xc0   : > { %798 = vmatmul.mubr.bf16.gmra.mxu0 %v517_v18  ;;  %878 = vmatmul.mubr.bf16.gmra.mxu1 %v533_v19  ;;  %v1061_v19 = vld [vmem:[%s2912_s29 + $0x8] sm:$0xff] }
  0xc1   : > { %807 = vmatprep.mubr.bf16.mxu0 %v520_v20  ;;  %887 = vmatprep.mubr.bf16.mxu1 %v536_v21  ;;  %v1093_v20 = vld [vmem:[%s2912_s29 + $0x108] sm:$0xff] }
  0xc8   : > { %808 = vmatmul.mubr.bf16.gmra.mxu0 %v519_v30  ;;  %888 = vmatmul.mubr.bf16.gmra.mxu1 %v535_v31 }
  0xc9   : > { %817 = vmatprep.mubr.bf16.mxu0 %v522_v32  ;;  %897 = vmatprep.mubr.bf16.mxu1 %v538_v33  ;;  %v1063_v32 = vld [vmem:[%s2912_s29 + $0x18] sm:$0xff] }
  0xca   : > { %v1095_v33 = vld [vmem:[%s2912_s29 + $0x118] sm:$0xff] }
  0xd0   : > { %818 = vmatmul.mubr.bf16.gmra.mxu0 %v521_v42  ;;  %898 = vmatmul.mubr.bf16.gmra.mxu1 %v537_v43  ;;  %v1096_v42 = vld [vmem:[%s2912_s29 + $0x120] sm:$0xff] }
  0xd1   : > { %827 = vmatprep.mubr.bf16.mxu0 %v524_v44  ;;  %907 = vmatprep.mubr.bf16.mxu1 %v540_v45 }
  0xd8   : > { %828 = vmatmul.mubr.bf16.gmra.mxu0 %v523_v54  ;;  %908 = vmatmul.mubr.bf16.gmra.mxu1 %v539_v55 }
  0xd9   : > { %837 = vmatprep.mubr.bf16.mxu0 %v526_v56  ;;  %917 = vmatprep.mubr.bf16.mxu1 %v542_v57 }
  0xe0   : > { %838 = vmatmul.mubr.bf16.gmra.mxu0 %v525_v62  ;;  %918 = vmatmul.mubr.bf16.gmra.mxu1 %v541_v63 }
 0x168   : > { %v769_v17 = vpop.f32.mrf.mxu0  ;;  %v849_v18 = vpop.f32.mrf.mxu1 }
 0x169   : > { %v1188_v21 = vadd.f32 %v1060_v15, %v769_v17  ;;  %v1220_v24 = vadd.f32 %v1092_v16, %v849_v18  ;;  %v1098_v15 = vld [vmem:[%s2912_s29 + $0x130] sm:$0xff]  ;;  %v1099_v16 = vld [vmem:[%s2912_s29 + $0x138] sm:$0xff] }
 0x16a   : > { %v771_v25 = vpop.f32.mrf.mxu0  ;;  %v851_v26 = vpop.f32.mrf.mxu1 }
 0x16b   : > { %v1189_v27 = vadd.f32 %v1061_v19, %v771_v25  ;;  %v1221_v28 = vadd.f32 %v1093_v20, %v851_v26  ;;  %v3020_v34 = vadd.f32 %v3012_v22, %v1188_v21  ;;  %v3026_v36 = vadd.f32 %v3012_v22, %v1220_v24  ;;  %v1068_v19 = vld [vmem:[%s2912_s29 + $0x40] sm:$0xff] }
 0x16c   : > { %v773_v30 = vpop.f32.mrf.mxu0  ;;  %v853_v31 = vpop.f32.mrf.mxu1  ;;  %v1100_v25 = vld [vmem:[%s2912_s29 + $0x140] sm:$0xff] }
 0x16d   : > { %v3023_v35 = vadd.f32 %v3014_v23, %v1189_v27  ;;  %v1222_v38 = vadd.f32 %v1094_v29, %v853_v31  ;;  %v3032_v43 = vadd.f32 %v3014_v23, %v1221_v28  ;;  %v1190_v51 = vadd.f32 %v1062_v37, %v773_v30  ;;  %v1069_v30 = vld [vmem:[%s2912_s29 + $0x48] sm:$0xff] }
 0x16e   : > { %v775_v39 = vpop.f32.mrf.mxu0  ;;  %v855_v40 = vpop.f32.mrf.mxu1 }
 0x16f   : > { %v1191_v44 = vadd.f32 %v1063_v32, %v775_v39  ;;  %v1223_v45 = vadd.f32 %v1095_v33, %v855_v40  ;;  %v1335_v46 = vadd.f32 %v3023_v35, %v3020_v34  ;;  %v3042_v57 = vadd.f32 %v3012_v22, %v1222_v38  ;;  %v1101_v32 = vld [vmem:[%s2912_s29 + $0x148] sm:$0xff] }
 0x170   : > { %v779_v47 = vpop.f32.mrf.mxu0  ;;  %v859_v49 = vpop.f32.mrf.mxu1  ;;  %v1383_v62 = vadd.f32 %v3032_v43, %v3026_v36  ;;  %v3057_v11 = vadd.f32 %v3012_v22, %v1190_v51 }
 0x171   : > { %v1192_v52 = vadd.f32 %v1064_v41, %v779_v47  ;;  %1336 = vadd.xlane.f32.xlu0 %v1335_v46  ;;  %v1224_v53 = vadd.f32 %v1096_v42, %v859_v49  ;;  %v3039_v54 = vadd.f32 %v3014_v23, %v1223_v45  ;;  %v3045_v58 = vadd.f32 %v3014_v23, %v1191_v44  ;;  %v1070_v45 = vld [vmem:[%s2912_s29 + $0x50] sm:$0xff] }
 0x172   : > { %v781_v55 = vpop.f32.mrf.mxu0  ;;  %v861_v56 = vpop.f32.mrf.mxu1 }
 0x173   : > { %v1193_v59 = vadd.f32 %v1065_v48, %v781_v55  ;;  %v1225_v61 = vadd.f32 %v1097_v50, %v861_v56  ;;  %v3051_v63 = vadd.f32 %v3012_v22, %v1192_v52  ;;  %v1386_v1 = vadd.f32 %v3039_v54, %v3042_v57  ;;  %v1071_v52 = vld [vmem:[%s2912_s29 + $0x58] sm:$0xff]  ;;  %v1102_v56 = vld [vmem:[%s2912_s29 + $0x150] sm:$0xff] }
 0x174   : > { %v783_v0 = vpop.f32.mrf.mxu0  ;;  %v863_v5 = vpop.f32.mrf.mxu1  ;;  %v3063_v13 = vadd.f32 %v3012_v22, %v1224_v53  ;;  %v1338_v24 = vadd.f32 %v3045_v58, %v3057_v11 }
 0x175   : > { %v3060_v12 = vadd.f32 %v3014_v23, %v1193_v59  ;;  %v3066_v14 = vadd.f32 %v3014_v23, %v1225_v61  ;;  %1384 = vadd.xlane.f32.xlu0 %v1383_v62  ;;  %v1194_v17 = vadd.f32 %v1066_v60, %v783_v0  ;;  %1387 = vadd.xlane.f32.xlu1 %v1386_v1  ;;  %v1103_v59 = vld [vmem:[%s2912_s29 + $0x158] sm:$0xff]  ;;  %v1072_v1 = vld [vmem:[%s2912_s29 + $0x60] sm:$0xff] }
 0x176   : > { %v785_v18 = vpop.f32.mrf.mxu0  ;;  %v865_v20 = vpop.f32.mrf.mxu1  ;;  %v1226_v26 = vadd.f32 %v1098_v15, %v863_v5  ;;  %v1104_v15 = vld [vmem:[%s2912_s29 + $0x160] sm:$0xff] }
 0x177   : > { %v1195_v21 = vadd.f32 %v1067_v3, %v785_v18  ;;  %v1227_v28 = vadd.f32 %v1099_v16, %v865_v20  ;;  %v1341_v29 = vadd.f32 %v3060_v12, %v3051_v63  ;;  %v1389_v38 = vadd.f32 %v3066_v14, %v3063_v13 }
 0x178   : > { %v789_v27 = vpop.f32.mrf.mxu0  ;;  %v869_v31 = vpop.f32.mrf.mxu1  ;;  %v3084_v39 = vadd.f32 %v3012_v22, %v1194_v17  ;;  %v3088_v47 = vadd.f32 %v3012_v22, %v1226_v26 }
 0x179   : > { %v3079_v33 = vadd.f32 %v3014_v23, %v1195_v21  ;;  %v1196_v37 = vadd.f32 %v1068_v19, %v789_v27  ;;  %1339 = vadd.xlane.f32.xlu0 %v1338_v24  ;;  %1342 = vadd.xlane.f32.xlu1 %v1341_v29  ;;  %v1228_v41 = vadd.f32 %v1100_v25, %v869_v31  ;;  %v1073_v21 = vld [vmem:[%s2912_s29 + $0x68] sm:$0xff] }
 0x17a   : > { %v791_v40 = vpop.f32.mrf.mxu0  ;;  %v871_v42 = vpop.f32.mrf.mxu1  ;;  %v3094_v49 = vadd.f32 %v3014_v23, %v1227_v28  ;;  %v1105_v25 = vld [vmem:[%s2912_s29 + $0x168] sm:$0xff] }
 0x17b   : > { %v1197_v44 = vadd.f32 %v1069_v30, %v791_v40  ;;  %v1229_v46 = vadd.f32 %v1101_v32, %v871_v42  ;;  %v3091_v48 = vadd.f32 %v3012_v22, %v1196_v37  ;;  %v1344_v51 = vadd.f32 %v3079_v33, %v3084_v39 }
 0x17c   : > { %v793_v50 = vpop.f32.mrf.mxu0  ;;  %v873_v53 = vpop.f32.mrf.mxu1  ;;  %v3105_v60 = vadd.f32 %v3012_v22, %v1228_v41  ;;  %v1392_v19 = vadd.f32 %v3094_v49, %v3088_v47 }
 0x17d   : > { %v3100_v55 = vadd.f32 %v3014_v23, %v1197_v44  ;;  %1390 = vadd.xlane.f32.xlu0 %v1389_v38  ;;  %v1198_v61 = vadd.f32 %v1070_v45, %v793_v50  ;;  %v3108_v62 = vadd.f32 %v3014_v23, %v1229_v46  ;;  %1345 = vadd.xlane.f32.xlu1 %v1344_v51  ;;  %v1074_v38 = vld [vmem:[%s2912_s29 + $0x70] sm:$0xff]  ;;  %v1075_v50 = vld [vmem:[%s2912_s29 + $0x78] sm:$0xff] }
 0x17e   : > { %v795_v0 = vpop.f32.mrf.mxu0  ;;  %v875_v3 = vpop.f32.mrf.mxu1  ;;  %v1230_v16 = vadd.f32 %v1102_v56, %v873_v53  ;;  %v1106_v53 = vld [vmem:[%s2912_s29 + $0x170] sm:$0xff]  ;;  %v1107_v56 = vld [vmem:[%s2912_s29 + $0x178] sm:$0xff] }
 0x17f   : > { %v1199_v5 = vadd.f32 %v1071_v52, %v795_v0  ;;  %v1231_v18 = vadd.f32 %v1103_v59, %v875_v3  ;;  %v1347_v20 = vadd.f32 %v3100_v55, %v3091_v48  ;;  %v3122_v28 = vadd.f32 %v3012_v22, %v1198_v61  ;;  %v1076_v3 = vld [vmem:[%s2912_s29 + $0x80] sm:$0xff] }
 0x180   : > { %v799_v17 = vpop.f32.mrf.mxu0  ;;  %v879_v24 = vpop.f32.mrf.mxu1  ;;  %v1395_v32 = vadd.f32 %v3108_v62, %v3105_v60  ;;  %v3128_v41 = vadd.f32 %v3012_v22, %v1230_v16  ;;  %v1108_v16 = vld [vmem:[%s2912_s29 + $0x180] sm:$0xff] }
 0x181   : > { %v3119_v26 = vadd.f32 %v3014_v23, %v1199_v5  ;;  %v1200_v27 = vadd.f32 %v1072_v1, %v799_v17  ;;  %1393 = vadd.xlane.f32.xlu1 %v1392_v19  ;;  %1348 = vadd.xlane.f32.xlu0 %v1347_v20  ;;  %v1232_v30 = vadd.f32 %v1104_v15, %v879_v24  ;;  %v1077_v24 = vld [vmem:[%s2912_s29 + $0x88] sm:$0xff] }
 0x182   : > { %v801_v29 = vpop.f32.mrf.mxu0  ;;  %v881_v31 = vpop.f32.mrf.mxu1  ;;  %v3134_v44 = vadd.f32 %v3014_v23, %v1231_v18 }
 0x183   : > { %v1201_v37 = vadd.f32 %v1073_v21, %v801_v29  ;;  %v1233_v40 = vadd.f32 %v1105_v25, %v881_v31  ;;  %v3131_v42 = vadd.f32 %v3012_v22, %v1200_v27  ;;  %v1350_v46 = vadd.f32 %v3119_v26, %v3122_v28  ;;  %v1109_v27 = vld [vmem:[%s2912_s29 + $0x188] sm:$0xff] }
 0x184   : > { %v803_v45 = vpop.f32.mrf.mxu0  ;;  %v883_v51 = vpop.f32.mrf.mxu1  ;;  %v3145_v59 = vadd.f32 %v3012_v22, %v1232_v30  ;;  %v1398_v20 = vadd.f32 %v3134_v44, %v3128_v41 }
 0x185   : > { %v3140_v52 = vadd.f32 %v3014_v23, %v1201_v37  ;;  %v1202_v61 = vadd.f32 %v1074_v38, %v803_v45  ;;  %v3148_v0 = vadd.f32 %v3014_v23, %v1233_v40  ;;  %1396 = vadd.xlane.f32.xlu0 %v1395_v32  ;;  %1351 = vadd.xlane.f32.xlu1 %v1350_v46  ;;  %v1078_v46 = vld [vmem:[%s2912_s29 + $0x90] sm:$0xff] }
 0x186   : > { %v805_v1 = vpop.f32.mrf.mxu0  ;;  %v885_v5 = vpop.f32.mrf.mxu1  ;;  %v1234_v17 = vadd.f32 %v1106_v53, %v883_v51 }
 0x187   : > { %v1203_v15 = vadd.f32 %v1075_v50, %v805_v1  ;;  %v1235_v19 = vadd.f32 %v1107_v56, %v885_v5  ;;  %v1353_v21 = vadd.f32 %v3140_v52, %v3131_v42  ;;  %v3162_v31 = vadd.f32 %v3012_v22, %v1202_v61 }
 0x188   : > { %v809_v18 = vpop.f32.mrf.mxu0  ;;  %v889_v25 = vpop.f32.mrf.mxu1  ;;  %v1401_v40 = vadd.f32 %v3148_v0, %v3145_v59  ;;  %v3168_v51 = vadd.f32 %v3012_v22, %v1234_v17  ;;  %v1111_v17 = vld [vmem:[%s2912_s29 + $0x198] sm:$0xff] }
 0x189   : > { %v3159_v29 = vadd.f32 %v3014_v23, %v1203_v15  ;;  %v1204_v30 = vadd.f32 %v1076_v3, %v809_v18  ;;  %1399 = vadd.xlane.f32.xlu1 %v1398_v20  ;;  %1354 = vadd.xlane.f32.xlu0 %v1353_v21  ;;  %v1236_v37 = vadd.f32 %v1108_v16, %v889_v25  ;;  %v1079_v3 = vld [vmem:[%s2912_s29 + $0x98] sm:$0xff]  ;;  %v1110_v16 = vld [vmem:[%s2912_s29 + $0x190] sm:$0xff] }
 0x18a   : > { %v811_v32 = vpop.f32.mrf.mxu0  ;;  %v891_v38 = vpop.f32.mrf.mxu1  ;;  %v3174_v56 = vadd.f32 %v3014_v23, %v1235_v19 }
 0x18b   : > { %v1205_v45 = vadd.f32 %v1077_v24, %v811_v32  ;;  %v1237_v50 = vadd.f32 %v1109_v27, %v891_v38  ;;  %v3171_v53 = vadd.f32 %v3012_v22, %v1204_v30  ;;  %v1356_v1 = vadd.f32 %v3159_v29, %v3162_v31  ;;  %v1080_v24 = vld [vmem:[%s2912_s29 + $0xa0] sm:$0xff] }
 0x18c   : > { %4058 = vst [vmem:[#allocation20_spill] sm:$0xff] %v3174_v56  ;;  %v813_v61 = vpop.f32.mrf.mxu0  ;;  %v893_v5 = vpop.f32.mrf.mxu1  ;;  %v3185_v18 = vadd.f32 %v3012_v22, %v1236_v37  ;;  %v1112_v30 = vld [vmem:[%s2912_s29 + $0x1a0] sm:$0xff]  ;;  %v1404_v37 = vadd.f32 %v3174_v56, %v3168_v51  ;;  %v1117_v56 = vld [vmem:[%s2912_s29 + $0x1c8] sm:$0xff] }
 0x18d   : > { %4057 = vst [vmem:[#allocation19_spill] sm:$0xff] %v3171_v53  ;;  %v3180_v15 = vadd.f32 %v3014_v23, %v1205_v45  ;;  %v1206_v20 = vadd.f32 %v1078_v46, %v813_v61  ;;  %v3188_v19 = vadd.f32 %v3014_v23, %v1237_v50  ;;  %1402 = vadd.xlane.f32.xlu0 %v1401_v40  ;;  %v1081_v61 = vld [vmem:[%s2912_s29 + $0xa8] sm:$0xff] }
 0x18e   : > { %4060 = vst [vmem:[#allocation22_spill] sm:$0xff] %v3185_v18  ;;  %1357 = vadd.xlane.f32.xlu1 %v1356_v1  ;;  %v815_v21 = vpop.f32.mrf.mxu0  ;;  %v895_v25 = vpop.f32.mrf.mxu1  ;;  %v1238_v32 = vadd.f32 %v1110_v16, %v893_v5 }
 0x18f   : > { %4059 = vst [vmem:[#allocation21_spill] sm:$0xff] %v3180_v15  ;;  %4061 = vst [vmem:[#allocation23_spill] sm:$0xff] %v3188_v19  ;;  %v1207_v27 = vadd.f32 %v1079_v3, %v815_v21  ;;  %v1239_v45 = vadd.f32 %v1111_v17, %v895_v25  ;;  %v1359_v46 = vadd.f32 %v3180_v15, %v3171_v53 }
 0x190   : > { %v819_v38 = vpop.f32.mrf.mxu0  ;;  %v899_v50 = vpop.f32.mrf.mxu1  ;;  %v3202_v3 = vadd.f32 %v3012_v22, %v1206_v20  ;;  %v1407_v21 = vadd.f32 %v3188_v19, %v3185_v18  ;;  %v1116_v19 = vld [vmem:[%s2912_s29 + $0x1c0] sm:$0xff] }
 0x191   : > { %v3199_v40 = vadd.f32 %v3014_v23, %v1207_v27  ;;  %v1208_v1 = vadd.f32 %v1080_v24, %v819_v38  ;;  %1360 = vadd.xlane.f32.xlu0 %v1359_v46  ;;  %v1240_v16 = vadd.f32 %v1112_v30, %v899_v50  ;;  %v3208_v27 = vadd.f32 %v3012_v22, %v1238_v32  ;;  %v1115_v32 = vld [vmem:[%s2912_s29 + $0x1b8] sm:$0xff] }
 0x192   : > { %4063 = vst [vmem:[#allocation25_spill] sm:$0xff] %v3202_v3  ;;  %1405 = vadd.xlane.f32.xlu1 %v1404_v37  ;;  %v821_v5 = vpop.f32.mrf.mxu0  ;;  %v901_v17 = vpop.f32.mrf.mxu1  ;;  %v3214_v24 = vadd.f32 %v3014_v23, %v1239_v45  ;;  %v1083_v37 = vld [vmem:[%s2912_s29 + $0xb8] sm:$0xff] }
 0x193   : > { %4062 = vst [vmem:[#allocation24_spill] sm:$0xff] %v3199_v40  ;;  %v1209_v25 = vadd.f32 %v1081_v61, %v821_v5  ;;  %v1241_v15 = vadd.f32 %v1113_v9, %v901_v17  ;;  %4064 = vst [vmem:[#allocation26_spill] sm:$0xff] %v3208_v27  ;;  %v3211_v20 = vadd.f32 %v3012_v22, %v1208_v1  ;;  %v1114_v9 = vld [vmem:[%s2912_s29 + $0x1b0] sm:$0xff]  ;;  %v1084_v17 = vld [vmem:[%s2912_s29 + $0xc0] sm:$0xff] }
 0x194   : > { %4066 = vst [vmem:[#allocation28_spill] sm:$0xff] %v3214_v24  ;;  %v823_v38 = vpop.f32.mrf.mxu0  ;;  %v1362_v30 = vadd.f32 %v3199_v40, %v3202_v3  ;;  %v903_v46 = vpop.f32.mrf.mxu1  ;;  %v3225_v50 = vadd.f32 %v3012_v22, %v1240_v16  ;;  %v1410_v16 = vadd.f32 %v3214_v24, %v3208_v27  ;;  %v1121_v27 = vld [vmem:[%s2912_s29 + $0x1e8] sm:$0xff] }
 0x195   : > { %4065 = vst [vmem:[#allocation27_spill] sm:$0xff] %v3211_v20  ;;  %v3220_v61 = vadd.f32 %v3014_v23, %v1209_v25  ;;  %v1210_v1 = vadd.f32 %v1082_v7, %v823_v38  ;;  %v3228_v45 = vadd.f32 %v3014_v23, %v1241_v15  ;;  %1408 = vadd.xlane.f32.xlu0 %v1407_v21  ;;  %v1085_v38 = vld [vmem:[%s2912_s29 + $0xc8] sm:$0xff] }
 0x196   : > { %4068 = vst [vmem:[#allocation30_spill] sm:$0xff] %v3225_v50  ;;  %1363 = vadd.xlane.f32.xlu1 %v1362_v30  ;;  %v825_v5 = vpop.f32.mrf.mxu0  ;;  %v905_v40 = vpop.f32.mrf.mxu1  ;;  %v1242_v25 = vadd.f32 %v1114_v9, %v903_v46 }
 0x197   : > { %4067 = vst [vmem:[#allocation29_spill] sm:$0xff] %v3220_v61  ;;  %4069 = vst [vmem:[#allocation31_spill] sm:$0xff] %v3228_v45  ;;  %v1211_v3 = vadd.f32 %v1083_v37, %v825_v5  ;;  %v1243_v53 = vadd.f32 %v1115_v32, %v905_v40  ;;  %v1365_v7 = vadd.f32 %v3220_v61, %v3211_v20  ;;  %v1086_v61 = vld [vmem:[%s2912_s29 + $0xd0] sm:$0xff] }
 0x198   : > { %v829_v18 = vpop.f32.mrf.mxu0  ;;  %v909_v15 = vpop.f32.mrf.mxu1  ;;  %v3242_v37 = vadd.f32 %v3012_v22, %v1210_v1  ;;  %v1413_v32 = vadd.f32 %v3228_v45, %v3225_v50  ;;  %v1120_v45 = vld [vmem:[%s2912_s29 + $0x1e0] sm:$0xff] }
 0x199   : > { %v3239_v21 = vadd.f32 %v3014_v23, %v1211_v3  ;;  %v1212_v30 = vadd.f32 %v1084_v17, %v829_v18  ;;  %1366 = vadd.xlane.f32.xlu0 %v1365_v7  ;;  %v1244_v46 = vadd.f32 %v1116_v19, %v909_v15  ;;  %v3248_v3 = vadd.f32 %v3012_v22, %v1242_v25  ;;  %v1119_v25 = vld [vmem:[%s2912_s29 + $0x1d8] sm:$0xff] }
 0x19a   : > { %4071 = vst [vmem:[#allocation33_spill] sm:$0xff] %v3242_v37  ;;  %1411 = vadd.xlane.f32.xlu1 %v1410_v16  ;;  %v831_v40 = vpop.f32.mrf.mxu0  ;;  %v911_v9 = vpop.f32.mrf.mxu1  ;;  %v3254_v1 = vadd.f32 %v3014_v23, %v1243_v53  ;;  %v1087_v16 = vld [vmem:[%s2912_s29 + $0xd8] sm:$0xff] }
 0x19b   : > { %4070 = vst [vmem:[#allocation32_spill] sm:$0xff] %v3239_v21  ;;  %v1213_v5 = vadd.f32 %v1085_v38, %v831_v40  ;;  %v1245_v20 = vadd.f32 %v1117_v56, %v911_v9  ;;  %v3251_v18 = vadd.f32 %v3012_v22, %v1212_v30  ;;  %v1368_v19 = vadd.f32 %v3239_v21, %v3242_v37  ;;  %v1118_v56 = vld [vmem:[%s2912_s29 + $0x1d0] sm:$0xff]  ;;  %v1088_v9 = vld [vmem:[%s2912_s29 + $0xe0] sm:$0xff] }
 0x19c   : > { %v833_v17 = vpop.f32.mrf.mxu0  ;;  %v913_v7 = vpop.f32.mrf.mxu1  ;;  %v3265_v15 = vadd.f32 %v3012_v22, %v1244_v46  ;;  %v1416_v46 = vadd.f32 %v3254_v1, %v3248_v3 }
 0x19d   : > { %4072 = vst [vmem:[#allocation34_spill] sm:$0xff] %v3251_v18  ;;  %v3260_v38 = vadd.f32 %v3014_v23, %v1213_v5  ;;  %v1214_v30 = vadd.f32 %v1086_v61, %v833_v17  ;;  %v3268_v53 = vadd.f32 %v3014_v23, %v1245_v20  ;;  %1414 = vadd.xlane.f32.xlu0 %v1413_v32  ;;  %v1089_v17 = vld [vmem:[%s2912_s29 + $0xe8] sm:$0xff] }
 0x19e   : > { %1369 = vadd.xlane.f32.xlu1 %v1368_v19  ;;  %v835_v40 = vpop.f32.mrf.mxu0  ;;  %v915_v21 = vpop.f32.mrf.mxu1  ;;  %v1246_v5 = vadd.f32 %v1118_v56, %v913_v7  ;;  %v1090_v56 = vld [vmem:[%s2912_s29 + $0xf0] sm:$0xff] }
 0x19f   : > { %4073 = vst [vmem:[#allocation35_spill] sm:$0xff] %v3260_v38  ;;  %4074 = vst [vmem:[#allocation36_spill] sm:$0xff] %v3268_v53  ;;  %v1215_v37 = vadd.f32 %v1087_v16, %v835_v40  ;;  %v1247_v24 = vadd.f32 %v1119_v25, %v915_v21  ;;  %v1371_v61 = vadd.f32 %v3260_v38, %v3251_v18 }
 0x1a0   : > { %v839_v50 = vpop.f32.mrf.mxu0  ;;  %v919_v20 = vpop.f32.mrf.mxu1  ;;  %v3282_v16 = vadd.f32 %v3012_v22, %v1214_v30  ;;  %v1419_v40 = vadd.f32 %v3268_v53, %v3265_v15 }
 0x1a1   : > { %v3279_v32 = vadd.f32 %v3014_v23, %v1215_v37  ;;  %v1216_v19 = vadd.f32 %v1088_v9, %v839_v50  ;;  %1372 = vadd.xlane.f32.xlu0 %v1371_v61  ;;  %v1248_v7 = vadd.f32 %v1120_v45, %v919_v20  ;;  %v3288_v37 = vadd.f32 %v3012_v22, %v1246_v5 }
 0x1a2   : > { %4076 = vst [vmem:[#allocation38_spill] sm:$0xff] %v3282_v16  ;;  %1417 = vadd.xlane.f32.xlu1 %v1416_v46  ;;  %v841_v21 = vpop.f32.mrf.mxu0  ;;  %v921_v25 = vpop.f32.mrf.mxu1  ;;  %v3294_v30 = vadd.f32 %v3014_v23, %v1247_v24  ;;  %v1091_v46 = vld [vmem:[%s2912_s29 + $0xf8] sm:$0xff] }
 0x1a3   : > { %4075 = vst [vmem:[#allocation37_spill] sm:$0xff] %v3279_v32  ;;  %v1217_v38 = vadd.f32 %v1089_v17, %v841_v21  ;;  %v1249_v18 = vadd.f32 %v1121_v27, %v921_v25  ;;  %v3291_v50 = vadd.f32 %v3012_v22, %v1216_v19  ;;  %v1374_v45 = vadd.f32 %v3279_v32, %v3282_v16  ;;  %v1122_v27 = vld [vmem:[%s2912_s29 + $0x1f0] sm:$0xff]  ;;  %v1123_v21 = vld [vmem:[%s2912_s29 + $0x1f8] sm:$0xff] }
 0x1a4   : > { %v843_v9 = vpop.f32.mrf.mxu0  ;;  %v923_v61 = vpop.f32.mrf.mxu1  ;;  %v3305_v5 = vadd.f32 %v3012_v22, %v1248_v7 }
 0x1a5   : > { %v3300_v20 = vadd.f32 %v3014_v23, %v1217_v38  ;;  %v1218_v17 = vadd.f32 %v1090_v56, %v843_v9  ;;  %v3308_v19 = vadd.f32 %v3014_v23, %v1249_v18  ;;  %1420 = vadd.xlane.f32.xlu0 %v1419_v40  ;;  %v1250_v32 = vadd.f32 %v1122_v27, %v923_v61 }
 0x1a6   : > { %1375 = vadd.xlane.f32.xlu1 %v1374_v45  ;;  %v845_v24 = vpop.f32.mrf.mxu0  ;;  %v925_v25 = vpop.f32.mrf.mxu1  ;;  %v1422_v38 = vadd.f32 %v3294_v30, %v3288_v37  ;;  %v4077_v61 = vrot.slane %v2994_v6, %v2990_v2  ;;  %v3340_v27 = vrot.slane %v2999_v8, %v2990_v2 }
 0x1a7   : > { %v1219_v53 = vadd.f32 %v1091_v46, %v845_v24  ;;  %v1251_v16 = vadd.f32 %v1123_v21, %v925_v25  ;;  %v1377_v56 = vadd.f32 %v3300_v20, %v3291_v50  ;;  %v3315_v9 = vadd.f32 %v3012_v22, %v1218_v17 }
 0x1a8   : > { %v1425_v18 = vadd.f32 %v3308_v19, %v3305_v5  ;;  %v3325_v45 = vadd.f32 %v3012_v22, %v1250_v32  ;;  %v3336_v17 = vrot.slane %v4077_v61, %v2990_v2  ;;  %v4078_v22 = vrot.slane %v2994_v6, %v2992_v4 }
 0x1a9   : > { %v3318_v7 = vadd.f32 %v3014_v23, %v1219_v53  ;;  %1378 = vadd.xlane.f32.xlu0 %v1377_v56  ;;  %v3328_v46 = vadd.f32 %v3014_v23, %v1251_v16  ;;  %v3350_v32 = vrot.slane %v3004_v10, %v2992_v4 }
 0x1aa   : > { %1423 = vadd.xlane.f32.xlu1 %v1422_v38  ;;  %v3346_v23 = vrot.slane %v4078_v22, %v2992_v4 }
 0x1ab   : > { %v1380_v40 = vadd.f32 %v3318_v7, %v3315_v9  ;;  %v1428_v53 = vadd.f32 %v3328_v46, %v3325_v45 }
 0x1ad   : > { %1426 = vadd.xlane.f32.xlu0 %v1425_v18 }
 0x1ae   : > { %1381 = vadd.xlane.f32.xlu1 %v1380_v40 }
 0x1b2   : > { %1429 = vadd.xlane.f32.xlu1 %v1428_v53 }
 0x1fa   : > { %v1337_v16 = vpop.xlane.xlu0 %1336 }
 0x1fb   : > { %v1432_v21 = vmul.f32 0.00390625, %v1337_v16 }
 0x1fd   : > { %v3353_v24 = vsub.f32 %v3020_v34, %v1432_v21  ;;  %v3356_v25 = vsub.f32 %v3023_v35, %v1432_v21 }
 0x1fe   : > { %v1385_v2 = vpop.xlane.xlu0 %1384  ;;  %v1388_v8 = vpop.xlane.xlu1 %1387 }
 0x1ff   : > { %v1448_v38 = vmul.f32 0.00390625, %v1385_v2  ;;  %v1528_v6 = vmul.f32 %v3353_v24, %v3353_v24  ;;  %v1529_v56 = vmul.f32 %v3356_v25, %v3356_v25  ;;  %v1449_v18 = vmul.f32 0.00390625, %v1388_v8 }
 0x201   : > { %v3363_v4 = vsub.f32 %v3026_v36, %v1448_v38  ;;  %v3366_v10 = vsub.f32 %v3032_v43, %v1448_v38  ;;  %v1592_v34 = vadd.f32 %v1529_v56, %v1528_v6  ;;  %v3373_v16 = vsub.f32 %v3042_v57, %v1449_v18 }
 0x202   : > { %v1340_v40 = vpop.xlane.xlu0 %1339  ;;  %v1343_v53 = vpop.xlane.xlu1 %1342  ;;  %v3376_v36 = vsub.f32 %v3039_v54, %v1449_v18 }
 0x203   : > { %v1433_v35 = vmul.f32 0.00390625, %v1340_v40  ;;  %1593 = vadd.xlane.f32.xlu0 %v1592_v34  ;;  %v1560_v61 = vmul.f32 %v3363_v4, %v3363_v4  ;;  %v1561_v22 = vmul.f32 %v3366_v10, %v3366_v10  ;;  %v1434_v21 = vmul.f32 0.00390625, %v1343_v53 }
 0x204   : > { %4079 = vst [vmem:[#allocation39_spill] sm:$0xff] %v3376_v36 }
 0x205   : > { %v3379_v43 = vsub.f32 %v3057_v11, %v1433_v35  ;;  %v3382_v2 = vsub.f32 %v3045_v58, %v1433_v35  ;;  %v1640_v8 = vadd.f32 %v1561_v22, %v1560_v61  ;;  %v3385_v38 = vsub.f32 %v3051_v63, %v1434_v21 }
 0x206   : > { %v3388_v6 = vsub.f32 %v3060_v12, %v1434_v21  ;;  %v1391_v56 = vpop.xlane.xlu0 %1390  ;;  %v1346_v34 = vpop.xlane.xlu1 %1345  ;;  %v1562_v12 = vmul.f32 %v3373_v16, %v3373_v16  ;;  %v1563_v61 = vmul.f32 %v3376_v36, %v3376_v36 }
 0x207   : > { %v1450_v57 = vmul.f32 0.00390625, %v1391_v56  ;;  %1641 = vadd.xlane.f32.xlu0 %v1640_v8  ;;  %v1530_v54 = vmul.f32 %v3379_v43, %v3379_v43  ;;  %v1531_v11 = vmul.f32 %v3382_v2, %v3382_v2  ;;  %v1435_v18 = vmul.f32 0.00390625, %v1346_v34 }
 0x208   : > { %v1532_v58 = vmul.f32 %v3385_v38, %v3385_v38  ;;  %v1533_v63 = vmul.f32 %v3388_v6, %v3388_v6  ;;  %v1643_v36 = vadd.f32 %v1563_v61, %v1562_v12 }
 0x209   : > { %v3401_v40 = vsub.f32 %v3063_v13, %v1450_v57  ;;  %v3404_v35 = vsub.f32 %v3066_v14, %v1450_v57  ;;  %v1595_v53 = vadd.f32 %v1531_v11, %v1530_v54  ;;  %v3409_v22 = vsub.f32 %v3084_v39, %v1435_v18 }
 0x20a   : > { %v3412_v21 = vsub.f32 %v3079_v33, %v1435_v18  ;;  %v1598_v8 = vadd.f32 %v1533_v63, %v1532_v58  ;;  %v1394_v56 = vpop.xlane.xlu1 %1393  ;;  %v1349_v34 = vpop.xlane.xlu0 %1348 }
 0x20b   : > { %1596 = vadd.xlane.f32.xlu1 %v1595_v53  ;;  %v1564_v13 = vmul.f32 %v3401_v40, %v3401_v40  ;;  %v1565_v14 = vmul.f32 %v3404_v35, %v3404_v35  ;;  %v1451_v57 = vmul.f32 0.00390625, %v1394_v56  ;;  %v1436_v54 = vmul.f32 0.00390625, %v1349_v34 }
 0x20c   : > { %1599 = vadd.xlane.f32.xlu0 %v1598_v8  ;;  %v1534_v39 = vmul.f32 %v3409_v22, %v3409_v22  ;;  %v1535_v33 = vmul.f32 %v3412_v21, %v3412_v21 }
 0x20d   : > { %v1646_v11 = vadd.f32 %v1565_v14, %v1564_v13  ;;  %v3423_v18 = vsub.f32 %v3088_v47, %v1451_v57  ;;  %v3426_v58 = vsub.f32 %v3094_v49, %v1451_v57  ;;  %v3429_v63 = vsub.f32 %v3091_v48, %v1436_v54 }
 0x20e   : > { %v3432_v53 = vsub.f32 %v3100_v55, %v1436_v54  ;;  %v1397_v8 = vpop.xlane.xlu0 %1396  ;;  %v1352_v12 = vpop.xlane.xlu1 %1351  ;;  %v1601_v49 = vadd.f32 %v1535_v33, %v1534_v39 }
 0x20f   : > { %1644 = vadd.xlane.f32.xlu1 %v1643_v36  ;;  %v1452_v61 = vmul.f32 0.00390625, %v1397_v8  ;;  %v1437_v56 = vmul.f32 0.00390625, %v1352_v12  ;;  %v1536_v34 = vmul.f32 %v3429_v63, %v3429_v63  ;;  %v1566_v48 = vmul.f32 %v3423_v18, %v3423_v18 }
 0x210   : > { %1647 = vadd.xlane.f32.xlu0 %v1646_v11  ;;  %v1537_v47 = vmul.f32 %v3432_v53, %v3432_v53  ;;  %v1567_v55 = vmul.f32 %v3426_v58, %v3426_v58 }
 0x211   : > { %v3443_v13 = vsub.f32 %v3105_v60, %v1452_v61  ;;  %v3446_v36 = vsub.f32 %v3108_v62, %v1452_v61  ;;  %v3449_v14 = vsub.f32 %v3122_v28, %v1437_v56  ;;  %v3452_v57 = vsub.f32 %v3119_v26, %v1437_v56 }
 0x212   : > { %v1400_v54 = vpop.xlane.xlu1 %1399  ;;  %v1355_v11 = vpop.xlane.xlu0 %1354  ;;  %v1604_v39 = vadd.f32 %v1537_v47, %v1536_v34  ;;  %v1649_v62 = vadd.f32 %v1567_v55, %v1566_v48 }
 0x213   : > { %1602 = vadd.xlane.f32.xlu1 %v1601_v49  ;;  %v1453_v33 = vmul.f32 0.00390625, %v1400_v54  ;;  %v1438_v8 = vmul.f32 0.00390625, %v1355_v11  ;;  %v1568_v12 = vmul.f32 %v3443_v13, %v3443_v13  ;;  %v1569_v60 = vmul.f32 %v3446_v36, %v3446_v36 }
 0x214   : > { %1605 = vadd.xlane.f32.xlu0 %v1604_v39  ;;  %v1538_v28 = vmul.f32 %v3449_v14, %v3449_v14  ;;  %v1539_v26 = vmul.f32 %v3452_v57, %v3452_v57 }
 0x215   : > { %v3463_v61 = vsub.f32 %v3128_v41, %v1453_v33  ;;  %v3466_v56 = vsub.f32 %v3134_v44, %v1453_v33  ;;  %v3469_v34 = vsub.f32 %v3131_v42, %v1438_v8  ;;  %v3472_v47 = vsub.f32 %v3140_v52, %v1438_v8 }
 0x216   : > { %v1403_v49 = vpop.xlane.xlu0 %1402  ;;  %v1652_v55 = vadd.f32 %v1569_v60, %v1568_v12  ;;  %v1607_v44 = vadd.f32 %v1539_v26, %v1538_v28 }
 0x217   : > { %v1358_v48 = vpop.xlane.xlu1 %1357  ;;  %1650 = vadd.xlane.f32.xlu1 %v1649_v62  ;;  %v1454_v54 = vmul.f32 0.00390625, %v1403_v49  ;;  %v1540_v39 = vmul.f32 %v3469_v34, %v3469_v34  ;;  %v1541_v41 = vmul.f32 %v3472_v47, %v3472_v47  ;;  %v1570_v42 = vmul.f32 %v3463_v61, %v3463_v61 }
 0x218   : > { %v1439_v11 = vmul.f32 0.00390625, %v1358_v48  ;;  %1653 = vadd.xlane.f32.xlu0 %v1652_v55  ;;  %v1571_v52 = vmul.f32 %v3466_v56, %v3466_v56 }
 0x219   : > { %v3483_v33 = vsub.f32 %v3145_v59, %v1454_v54  ;;  %v3486_v8 = vsub.f32 %v3148_v0, %v1454_v54  ;;  %v1610_v26 = vadd.f32 %v1541_v41, %v1540_v39  ;;  %v4086_v41 = vld [vmem:[#allocation19_spill] sm:$0xff] }
 0x21a   : > { %v3489_v12 = vsub.f32 %v3162_v31, %v1439_v11  ;;  %v3492_v60 = vsub.f32 %v3159_v29, %v1439_v11  ;;  %v1361_v28 = vpop.xlane.xlu0 %1360  ;;  %v1655_v0 = vadd.f32 %v1571_v52, %v1570_v42  ;;  %v4084_v11 = vld [vmem:[#allocation20_spill] sm:$0xff] }
 0x21b   : > { %4080 = vst [vmem:[#allocation40_spill] sm:$0xff] %v3486_v8  ;;  %v1406_v62 = vpop.xlane.xlu1 %1405  ;;  %1608 = vadd.xlane.f32.xlu1 %v1607_v44  ;;  %v1440_v48 = vmul.f32 0.00390625, %v1361_v28  ;;  %v1572_v55 = vmul.f32 %v3483_v33, %v3483_v33  ;;  %v1573_v59 = vmul.f32 %v3486_v8, %v3486_v8 }
 0x21c   : > { %4081 = vst [vmem:[#allocation41_spill] sm:$0xff] %v3489_v12  ;;  %4082 = vst [vmem:[#allocation42_spill] sm:$0xff] %v3492_v60  ;;  %v1455_v49 = vmul.f32 0.00390625, %v1406_v62  ;;  %1611 = vadd.xlane.f32.xlu0 %v1610_v26  ;;  %v1542_v31 = vmul.f32 %v3489_v12, %v3489_v12  ;;  %v1543_v29 = vmul.f32 %v3492_v60, %v3492_v60  ;;  %v4088_v62 = vld [vmem:[#allocation21_spill] sm:$0xff] }
 0x21d   : > { %v3509_v44 = vsub.f32 %v4086_v41, %v1440_v48  ;;  %v3512_v28 = vsub.f32 %v4088_v62, %v1440_v48  ;;  %v1658_v52 = vadd.f32 %v1573_v59, %v1572_v55  ;;  %v4090_v41 = vld [vmem:[#allocation22_spill] sm:$0xff]  ;;  %v4092_v55 = vld [vmem:[#allocation23_spill] sm:$0xff] }
 0x21e   : > { %v3503_v54 = vsub.f32 %v3168_v51, %v1455_v49  ;;  %v3506_v39 = vsub.f32 %v4084_v11, %v1455_v49  ;;  %v1409_v26 = vpop.xlane.xlu0 %1408  ;;  %v1613_v49 = vadd.f32 %v1543_v29, %v1542_v31 }
 0x21f   : > { %4087 = vst [vmem:[#allocation19_spill] sm:$0xff] %v3509_v44  ;;  %4089 = vst [vmem:[#allocation21_spill] sm:$0xff] %v3512_v28  ;;  %v1364_v42 = vpop.xlane.xlu1 %1363  ;;  %1656 = vadd.xlane.f32.xlu1 %v1655_v0  ;;  %v1456_v12 = vmul.f32 0.00390625, %v1409_v26  ;;  %v1544_v60 = vmul.f32 %v3509_v44, %v3509_v44  ;;  %v1545_v51 = vmul.f32 %v3512_v28, %v3512_v28  ;;  %v4094_v0 = vld [vmem:[#allocation25_spill] sm:$0xff] }
 0x220   : > { %4083 = vst [vmem:[#allocation43_spill] sm:$0xff] %v3503_v54  ;;  %4085 = vst [vmem:[#allocation20_spill] sm:$0xff] %v3506_v39  ;;  %v1441_v8 = vmul.f32 0.00390625, %v1364_v42  ;;  %1659 = vadd.xlane.f32.xlu0 %v1658_v52  ;;  %v1574_v11 = vmul.f32 %v3503_v54, %v3503_v54  ;;  %v1575_v48 = vmul.f32 %v3506_v39, %v3506_v39  ;;  %v4096_v42 = vld [vmem:[#allocation24_spill] sm:$0xff] }
 0x221   : > { %v3523_v62 = vsub.f32 %v4090_v41, %v1456_v12  ;;  %v3526_v59 = vsub.f32 %v4092_v55, %v1456_v12  ;;  %v1616_v29 = vadd.f32 %v1545_v51, %v1544_v60  ;;  %v4100_v60 = vld [vmem:[#allocation28_spill] sm:$0xff] }
 0x222   : > { %v3529_v26 = vsub.f32 %v4094_v0, %v1441_v8  ;;  %v3532_v44 = vsub.f32 %v4096_v42, %v1441_v8  ;;  %v1367_v31 = vpop.xlane.xlu0 %1366  ;;  %v1661_v12 = vadd.f32 %v1575_v48, %v1574_v11  ;;  %v4098_v0 = vld [vmem:[#allocation26_spill] sm:$0xff] }
 0x223   : > { %4091 = vst [vmem:[#allocation22_spill] sm:$0xff] %v3523_v62  ;;  %4093 = vst [vmem:[#allocation23_spill] sm:$0xff] %v3526_v59  ;;  %v1412_v52 = vpop.xlane.xlu1 %1411  ;;  %1614 = vadd.xlane.f32.xlu1 %v1613_v49  ;;  %v1442_v28 = vmul.f32 0.00390625, %v1367_v31  ;;  %v1576_v39 = vmul.f32 %v3523_v62, %v3523_v62  ;;  %v1577_v41 = vmul.f32 %v3526_v59, %v3526_v59  ;;  %v4102_v49 = vld [vmem:[#allocation27_spill] sm:$0xff]  ;;  %v4104_v31 = vld [vmem:[#allocation29_spill] sm:$0xff] }
 0x224   : > { %4095 = vst [vmem:[#allocation25_spill] sm:$0xff] %v3529_v26  ;;  %4097 = vst [vmem:[#allocation24_spill] sm:$0xff] %v3532_v44  ;;  %v1457_v54 = vmul.f32 0.00390625, %v1412_v52  ;;  %1617 = vadd.xlane.f32.xlu0 %v1616_v29  ;;  %v1546_v55 = vmul.f32 %v3529_v26, %v3529_v26  ;;  %v1547_v8 = vmul.f32 %v3532_v44, %v3532_v44 }
 0x225   : > { %v3549_v52 = vsub.f32 %v4102_v49, %v1442_v28  ;;  %v3552_v62 = vsub.f32 %v4104_v31, %v1442_v28  ;;  %v1664_v48 = vadd.f32 %v1577_v41, %v1576_v39  ;;  %v4106_v49 = vld [vmem:[#allocation30_spill] sm:$0xff]  ;;  %v4107_v39 = vld [vmem:[#allocation31_spill] sm:$0xff] }
 0x226   : > { %v3543_v42 = vsub.f32 %v4098_v0, %v1457_v54  ;;  %v3546_v51 = vsub.f32 %v4100_v60, %v1457_v54  ;;  %v1415_v29 = vpop.xlane.xlu0 %1414  ;;  %v1619_v54 = vadd.f32 %v1547_v8, %v1546_v55 }
 0x227   : > { %4103 = vst [vmem:[#allocation27_spill] sm:$0xff] %v3549_v52  ;;  %4105 = vst [vmem:[#allocation29_spill] sm:$0xff] %v3552_v62  ;;  %v1370_v11 = vpop.xlane.xlu1 %1369  ;;  %1662 = vadd.xlane.f32.xlu1 %v1661_v12  ;;  %v1458_v26 = vmul.f32 0.00390625, %v1415_v29  ;;  %v1548_v44 = vmul.f32 %v3549_v52, %v3549_v52  ;;  %v1549_v0 = vmul.f32 %v3552_v62, %v3552_v62  ;;  %v4108_v12 = vld [vmem:[#allocation33_spill] sm:$0xff] }
 0x228   : > { %4099 = vst [vmem:[#allocation26_spill] sm:$0xff] %v3543_v42  ;;  %4101 = vst [vmem:[#allocation28_spill] sm:$0xff] %v3546_v51  ;;  %v1443_v59 = vmul.f32 0.00390625, %v1370_v11  ;;  %1665 = vadd.xlane.f32.xlu0 %v1664_v48  ;;  %v1578_v60 = vmul.f32 %v3543_v42, %v3543_v42  ;;  %v1579_v28 = vmul.f32 %v3546_v51, %v3546_v51  ;;  %v4110_v11 = vld [vmem:[#allocation32_spill] sm:$0xff] }
 0x229   : > { %v3563_v31 = vsub.f32 %v4106_v49, %v1458_v26  ;;  %v3566_v41 = vsub.f32 %v4107_v39, %v1458_v26  ;;  %v1622_v8 = vadd.f32 %v1549_v0, %v1548_v44  ;;  %v4114_v0 = vld [vmem:[#allocation34_spill] sm:$0xff] }
 0x22a   : > { %v3569_v29 = vsub.f32 %v4108_v12, %v1443_v59  ;;  %v3572_v52 = vsub.f32 %v4110_v11, %v1443_v59  ;;  %v1373_v55 = vpop.xlane.xlu0 %1372  ;;  %v1667_v26 = vadd.f32 %v1579_v28, %v1578_v60  ;;  %v4115_v11 = vld [vmem:[#allocation35_spill] sm:$0xff] }
 0x22b   : > { %v1418_v48 = vpop.xlane.xlu1 %1417  ;;  %1620 = vadd.xlane.f32.xlu1 %v1619_v54  ;;  %v1444_v62 = vmul.f32 0.00390625, %v1373_v55  ;;  %v1580_v51 = vmul.f32 %v3563_v31, %v3563_v31  ;;  %v1581_v49 = vmul.f32 %v3566_v41, %v3566_v41 }
 0x22c   : > { %4109 = vst [vmem:[#allocation30_spill] sm:$0xff] %v3569_v29  ;;  %4111 = vst [vmem:[#allocation31_spill] sm:$0xff] %v3572_v52  ;;  %v1459_v42 = vmul.f32 0.00390625, %v1418_v48  ;;  %1623 = vadd.xlane.f32.xlu0 %v1622_v8  ;;  %v1550_v39 = vmul.f32 %v3569_v29, %v3569_v29  ;;  %v1551_v59 = vmul.f32 %v3572_v52, %v3572_v52 }
 0x22d   : > { %v3589_v54 = vsub.f32 %v4114_v0, %v1444_v62  ;;  %v3592_v48 = vsub.f32 %v4115_v11, %v1444_v62  ;;  %v1670_v28 = vadd.f32 %v1581_v49, %v1580_v51  ;;  %v4117_v51 = vld [vmem:[#allocation36_spill] sm:$0xff] }
 0x22e   : > { %v3583_v12 = vsub.f32 %v3248_v3, %v1459_v42  ;;  %v3586_v44 = vsub.f32 %v3254_v1, %v1459_v42  ;;  %v1421_v55 = vpop.xlane.xlu0 %1420  ;;  %v1625_v1 = vadd.f32 %v1551_v59, %v1550_v39 }
 0x22f   : > { %4116 = vst [vmem:[#allocation34_spill] sm:$0xff] %v3592_v48  ;;  %v1376_v60 = vpop.xlane.xlu1 %1375  ;;  %1668 = vadd.xlane.f32.xlu1 %v1667_v26  ;;  %v1460_v8 = vmul.f32 0.00390625, %v1421_v55  ;;  %v1552_v52 = vmul.f32 %v3589_v54, %v3589_v54  ;;  %v1553_v3 = vmul.f32 %v3592_v48, %v3592_v48  ;;  %v4118_v26 = vld [vmem:[#allocation38_spill] sm:$0xff]  ;;  %v4119_v55 = vld [vmem:[#allocation37_spill] sm:$0xff] }
 0x230   : > { %4112 = vst [vmem:[#allocation33_spill] sm:$0xff] %v3583_v12  ;;  %4113 = vst [vmem:[#allocation32_spill] sm:$0xff] %v3586_v44  ;;  %v1445_v29 = vmul.f32 0.00390625, %v1376_v60  ;;  %1671 = vadd.xlane.f32.xlu0 %v1670_v28  ;;  %v1582_v42 = vmul.f32 %v3583_v12, %v3583_v12  ;;  %v1583_v62 = vmul.f32 %v3586_v44, %v3586_v44 }
 0x231   : > { %v3603_v0 = vsub.f32 %v3265_v15, %v1460_v8  ;;  %v3606_v49 = vsub.f32 %v4117_v51, %v1460_v8  ;;  %v1628_v59 = vadd.f32 %v1553_v3, %v1552_v52 }
 0x232   : > { %v3609_v11 = vsub.f32 %v4118_v26, %v1445_v29  ;;  %v3612_v60 = vsub.f32 %v4119_v55, %v1445_v29  ;;  %v1379_v39 = vpop.xlane.xlu0 %1378  ;;  %v1673_v8 = vadd.f32 %v1583_v62, %v1582_v42 }
 0x233   : > { %v1424_v28 = vpop.xlane.xlu1 %1423  ;;  %1626 = vadd.xlane.f32.xlu1 %v1625_v1  ;;  %v1446_v48 = vmul.f32 0.00390625, %v1379_v39  ;;  %v1584_v44 = vmul.f32 %v3603_v0, %v3603_v0  ;;  %v1585_v15 = vmul.f32 %v3606_v49, %v3606_v49 }
 0x234   : > { %v1461_v12 = vmul.f32 0.00390625, %v1424_v28  ;;  %1629 = vadd.xlane.f32.xlu0 %v1628_v59  ;;  %v1554_v51 = vmul.f32 %v3609_v11, %v3609_v11  ;;  %v1555_v29 = vmul.f32 %v3612_v60, %v3612_v60 }
 0x235   : > { %v3629_v3 = vsub.f32 %v3291_v50, %v1446_v48  ;;  %v3632_v1 = vsub.f32 %v3300_v20, %v1446_v48  ;;  %v1676_v62 = vadd.f32 %v1585_v15, %v1584_v44 }
 0x236   : > { %v3623_v26 = vsub.f32 %v3288_v37, %v1461_v12  ;;  %v3626_v52 = vsub.f32 %v3294_v30, %v1461_v12  ;;  %v1427_v55 = vpop.xlane.xlu0 %1426  ;;  %v1631_v30 = vadd.f32 %v1555_v29, %v1554_v51 }
 0x237   : > { %v1382_v42 = vpop.xlane.xlu1 %1381  ;;  %1674 = vadd.xlane.f32.xlu1 %v1673_v8  ;;  %v1462_v28 = vmul.f32 0.00390625, %v1427_v55  ;;  %v1556_v59 = vmul.f32 %v3629_v3, %v3629_v3  ;;  %v1557_v37 = vmul.f32 %v3632_v1, %v3632_v1 }
 0x238   : > { %v1447_v39 = vmul.f32 0.00390625, %v1382_v42  ;;  %1677 = vadd.xlane.f32.xlu0 %v1676_v62  ;;  %v1586_v50 = vmul.f32 %v3623_v26, %v3623_v26  ;;  %v1587_v20 = vmul.f32 %v3626_v52, %v3626_v52 }
 0x239   : > { %v3643_v12 = vsub.f32 %v3305_v5, %v1462_v28  ;;  %v3646_v44 = vsub.f32 %v3308_v19, %v1462_v28  ;;  %v1634_v51 = vadd.f32 %v1557_v37, %v1556_v59 }
 0x23a   : > { %v3649_v48 = vsub.f32 %v3315_v9, %v1447_v39  ;;  %v3652_v15 = vsub.f32 %v3318_v7, %v1447_v39  ;;  %v1679_v42 = vadd.f32 %v1587_v20, %v1586_v50 }
 0x23b   : > { %v1430_v8 = vpop.xlane.xlu1 %1429  ;;  %1632 = vadd.xlane.f32.xlu1 %v1631_v30  ;;  %v1588_v55 = vmul.f32 %v3643_v12, %v3643_v12  ;;  %v1589_v5 = vmul.f32 %v3646_v44, %v3646_v44 }
 0x23c   : > { %v1463_v29 = vmul.f32 0.00390625, %v1430_v8  ;;  %1635 = vadd.xlane.f32.xlu0 %v1634_v51  ;;  %v1558_v19 = vmul.f32 %v3649_v48, %v3649_v48  ;;  %v1559_v9 = vmul.f32 %v3652_v15, %v3652_v15 }
 0x23d   : > { %v1682_v28 = vadd.f32 %v1589_v5, %v1588_v55 }
 0x23e   : > { %v3663_v7 = vsub.f32 %v3325_v45, %v1463_v29  ;;  %v3666_v62 = vsub.f32 %v3328_v46, %v1463_v29  ;;  %v1637_v39 = vadd.f32 %v1559_v9, %v1558_v19 }
 0x23f   : > { %1680 = vadd.xlane.f32.xlu1 %v1679_v42 }
 0x240   : > { %4120 = vst [vmem:[#allocation35_spill] sm:$0xff] %v3666_v62  ;;  %1683 = vadd.xlane.f32.xlu0 %v1682_v28  ;;  %v1590_v59 = vmul.f32 %v3663_v7, %v3663_v7  ;;  %v1591_v37 = vmul.f32 %v3666_v62, %v3666_v62 }
 0x242   : > { %v1685_v30 = vadd.f32 %v1591_v37, %v1590_v59 }
 0x243   : > { %1638 = vadd.xlane.f32.xlu1 %v1637_v39 }
 0x247   : > { %1686 = vadd.xlane.f32.xlu1 %v1685_v30 }
 0x28c   : > { %v1594_v50 = vpop.xlane.xlu0 %1593 }
 0x28d   : > { %v1688_v20 = vmul.f32 0.00390625, %v1594_v50 }
 0x28f   : > { %v1720_v45 = vadd.f32 1e-12, %v1688_v20 }
 0x290   : > { %v1642_v8 = vpop.xlane.xlu0 %1641 }
 0x291   : > { %2457 = vrsqrt.f32 %v1720_v45  ;;  %v1704_v46 = vmul.f32 0.00390625, %v1642_v8 }
 0x293   : > { %v1736_v51 = vadd.f32 1e-12, %v1704_v46 }
 0x294   : > { %v1597_v29 = vpop.xlane.xlu1 %1596 }
 0x295   : > { %2459 = vrsqrt.f32 %v1736_v51  ;;  %v1600_v55 = vpop.xlane.xlu0 %1599  ;;  %v1689_v5 = vmul.f32 0.00390625, %v1597_v29 }
 0x296   : > { %v1690_v42 = vmul.f32 0.00390625, %v1600_v55 }
 0x297   : > { %v1721_v19 = vadd.f32 1e-12, %v1689_v5 }
 0x298   : > { %v1722_v9 = vadd.f32 1e-12, %v1690_v42  ;;  %v1645_v28 = vpop.xlane.xlu1 %1644 }
 0x299   : > { %2461 = vrsqrt.f32 %v1721_v19  ;;  %v1648_v62 = vpop.xlane.xlu0 %1647  ;;  %v1705_v39 = vmul.f32 0.00390625, %v1645_v28 }
 0x29a   : > { %2463 = vrsqrt.f32 %v1722_v9  ;;  %v1706_v59 = vmul.f32 0.00390625, %v1648_v62 }
 0x29b   : > { %v1737_v37 = vadd.f32 1e-12, %v1705_v39 }
 0x29c   : > { %v1738_v30 = vadd.f32 1e-12, %v1706_v59  ;;  %v1603_v50 = vpop.xlane.xlu1 %1602 }
 0x29d   : > { %2465 = vrsqrt.f32 %v1737_v37  ;;  %v1691_v20 = vmul.f32 0.00390625, %v1603_v50  ;;  %v1606_v8 = vpop.xlane.xlu0 %1605 }
 0x29e   : > { %v2458_v45 = vpop.eup %2457  ;;  %2467 = vrsqrt.f32 %v1738_v30  ;;  %v1692_v29 = vmul.f32 0.00390625, %v1606_v8 }
 0x29f   : > { %v1784_v46 = vmul.f32 %v2458_v45, %v3353_v24  ;;  %v1785_v51 = vmul.f32 %v2458_v45, %v3356_v25  ;;  %v1723_v55 = vadd.f32 1e-12, %v1691_v20 }
 0x2a0   : > { %v1651_v5 = vpop.xlane.xlu1 %1650  ;;  %v1724_v19 = vadd.f32 1e-12, %v1692_v29 }
 0x2a1   : > { %v1866_v42 = vmul.f32 %v3336_v17, %v1784_v46  ;;  %v1867_v62 = vmul.f32 %v3340_v27, %v1785_v51  ;;  %2469 = vrsqrt.f32 %v1723_v55  ;;  %v1654_v28 = vpop.xlane.xlu0 %1653  ;;  %v1707_v39 = vmul.f32 0.00390625, %v1651_v5 }
 0x2a2   : > { %v2460_v9 = vpop.eup %2459  ;;  %2471 = vrsqrt.f32 %v1724_v19  ;;  %v1708_v30 = vmul.f32 0.00390625, %v1654_v28 }
 0x2a3   : > { %v1948_v59 = vadd.f32 %v3346_v23, %v1866_v42  ;;  %v1949_v37 = vadd.f32 %v3350_v32, %v1867_v62  ;;  %v1816_v24 = vmul.f32 %v2460_v9, %v3363_v4  ;;  %v1817_v25 = vmul.f32 %v2460_v9, %v3366_v10 }
 0x2a4   : > { %v1739_v50 = vadd.f32 1e-12, %v1707_v39  ;;  %v1609_v20 = vpop.xlane.xlu1 %1608  ;;  %v1740_v51 = vadd.f32 1e-12, %v1708_v30 }
 0x2a5   : > { %2012 = vst [vmem:[%s3681_s21] sm:$0xff] %v1948_v59  ;;  %2013 = vst [vmem:[%s3681_s21 + $0x8] sm:$0xff] %v1949_v37  ;;  %v1898_v45 = vmul.f32 %v3336_v17, %v1816_v24  ;;  %v1899_v8 = vmul.f32 %v3340_v27, %v1817_v25  ;;  %v1693_v46 = vmul.f32 0.00390625, %v1609_v20  ;;  %v1612_v10 = vpop.xlane.xlu0 %1611 }
 0x2a6   : > { %v2462_v4 = vpop.eup %2461  ;;  %2473 = vrsqrt.f32 %v1739_v50  ;;  %v1694_v28 = vmul.f32 0.00390625, %v1612_v10 }
 0x2a7   : > { %v2464_v29 = vpop.eup %2463  ;;  %v1980_v55 = vadd.f32 %v3346_v23, %v1898_v45  ;;  %v1981_v5 = vadd.f32 %v3350_v32, %v1899_v8  ;;  %v1786_v42 = vmul.f32 %v2462_v4, %v3379_v43  ;;  %v1787_v62 = vmul.f32 %v2462_v4, %v3382_v2 }
 0x2a8   : > { %v1788_v19 = vmul.f32 %v2464_v29, %v3385_v38  ;;  %v1789_v9 = vmul.f32 %v2464_v29, %v3388_v6  ;;  %2475 = vrsqrt.f32 %v1740_v51  ;;  %v1657_v39 = vpop.xlane.xlu1 %1656  ;;  %v1725_v24 = vadd.f32 1e-12, %v1693_v46  ;;  %v4121_v46 = vld [vmem:[#allocation39_spill] sm:$0xff] }
 0x2a9   : > { %2044 = vst [vmem:[%s3681_s21 + $0x100] sm:$0xff] %v1980_v55  ;;  %2045 = vst [vmem:[%s3681_s21 + $0x108] sm:$0xff] %v1981_v5  ;;  %v1868_v59 = vmul.f32 %v3336_v17, %v1786_v42  ;;  %v1869_v37 = vmul.f32 %v3340_v27, %v1787_v62  ;;  %v1726_v38 = vadd.f32 1e-12, %v1694_v28  ;;  %v1660_v30 = vpop.xlane.xlu0 %1659  ;;  %v1709_v6 = vmul.f32 0.00390625, %v1657_v39 }
 0x2aa   : > { %v2466_v25 = vpop.eup %2465  ;;  %v1870_v43 = vmul.f32 %v3336_v17, %v1788_v19  ;;  %v1871_v2 = vmul.f32 %v3340_v27, %v1789_v9  ;;  %v1710_v19 = vmul.f32 0.00390625, %v1660_v30 }
 0x2ab   : > { %v2468_v50 = vpop.eup %2467  ;;  %v1950_v20 = vadd.f32 %v3346_v23, %v1868_v59  ;;  %v1951_v45 = vadd.f32 %v3350_v32, %v1869_v37  ;;  %v1818_v8 = vmul.f32 %v2466_v25, %v3373_v16  ;;  %v1819_v4 = vmul.f32 %v2466_v25, %v4121_v46 }
 0x2ac   : > { %v1952_v51 = vadd.f32 %v3346_v23, %v1870_v43  ;;  %v1953_v10 = vadd.f32 %v3350_v32, %v1871_v2  ;;  %v1820_v29 = vmul.f32 %v2468_v50, %v3401_v40  ;;  %v1821_v55 = vmul.f32 %v2468_v50, %v3404_v35  ;;  %v1615_v5 = vpop.xlane.xlu1 %1614 }
 0x2ad   : > { %2014 = vst [vmem:[%s3681_s21 + $0x10] sm:$0xff] %v1950_v20  ;;  %2015 = vst [vmem:[%s3681_s21 + $0x18] sm:$0xff] %v1951_v45  ;;  %v1900_v42 = vmul.f32 %v3336_v17, %v1818_v8  ;;  %v1901_v62 = vmul.f32 %v3340_v27, %v1819_v4  ;;  %2477 = vrsqrt.f32 %v1726_v38  ;;  %v1741_v35 = vadd.f32 1e-12, %v1709_v6  ;;  %v1618_v28 = vpop.xlane.xlu0 %1617 }
 0x2ae   : > { %v2470_v16 = vpop.eup %2469  ;;  %2016 = vst [vmem:[%s3681_s21 + $0x20] sm:$0xff] %v1952_v51  ;;  %2017 = vst [vmem:[%s3681_s21 + $0x28] sm:$0xff] %v1953_v10  ;;  %v1902_v9 = vmul.f32 %v3336_v17, %v1820_v29  ;;  %v1903_v40 = vmul.f32 %v3340_v27, %v1821_v55  ;;  %2479 = vrsqrt.f32 %v1725_v24  ;;  %v1742_v38 = vadd.f32 1e-12, %v1710_v19 }
 0x2af   : > { %v1982_v39 = vadd.f32 %v3346_v23, %v1900_v42  ;;  %v1983_v59 = vadd.f32 %v3350_v32, %v1901_v62  ;;  %v1790_v37 = vmul.f32 %v2470_v16, %v3409_v22  ;;  %v1791_v25 = vmul.f32 %v2470_v16, %v3412_v21  ;;  %v2472_v24 = vpop.eup %2471 }
 0x2b0   : > { %v1984_v43 = vadd.f32 %v3346_v23, %v1902_v9  ;;  %v1985_v2 = vadd.f32 %v3350_v32, %v1903_v40  ;;  %2481 = vrsqrt.f32 %v1741_v35  ;;  %v1663_v30 = vpop.xlane.xlu1 %1662  ;;  %v1696_v20 = vmul.f32 0.00390625, %v1618_v28 }
 0x2b1   : > { %2046 = vst [vmem:[%s3681_s21 + $0x110] sm:$0xff] %v1982_v39  ;;  %2047 = vst [vmem:[%s3681_s21 + $0x118] sm:$0xff] %v1983_v59  ;;  %v1872_v6 = vmul.f32 %v3336_v17, %v1790_v37  ;;  %v1873_v50 = vmul.f32 %v3340_v27, %v1791_v25  ;;  %v1695_v45 = vmul.f32 0.00390625, %v1615_v5  ;;  %v1792_v22 = vmul.f32 %v2472_v24, %v3429_v63  ;;  %v1666_v8 = vpop.xlane.xlu0 %1665 }
 0x2b2   : > { %2048 = vst [vmem:[%s3681_s21 + $0x120] sm:$0xff] %v1984_v43  ;;  %2049 = vst [vmem:[%s3681_s21 + $0x128] sm:$0xff] %v1985_v2  ;;  %v1793_v21 = vmul.f32 %v2472_v24, %v3432_v53  ;;  %2483 = vrsqrt.f32 %v1742_v38  ;;  %v1711_v46 = vmul.f32 0.00390625, %v1663_v30  ;;  %v1728_v29 = vadd.f32 1e-12, %v1696_v20 }
 0x2b3   : > { %v2474_v4 = vpop.eup %2473  ;;  %v1954_v51 = vadd.f32 %v3346_v23, %v1872_v6  ;;  %v1955_v10 = vadd.f32 %v3350_v32, %v1873_v50  ;;  %v1727_v55 = vadd.f32 1e-12, %v1695_v45  ;;  %v1874_v5 = vmul.f32 %v3336_v17, %v1792_v22 }
 0x2b4   : > { %v1875_v42 = vmul.f32 %v3340_v27, %v1793_v21  ;;  %v1822_v63 = vmul.f32 %v2474_v4, %v3423_v18  ;;  %v1823_v62 = vmul.f32 %v2474_v4, %v3426_v58  ;;  %v1621_v53 = vpop.xlane.xlu1 %1620  ;;  %2485 = vrsqrt.f32 %v1728_v29 }
 0x2b5   : > { %v2476_v19 = vpop.eup %2475  ;;  %2018 = vst [vmem:[%s3681_s21 + $0x30] sm:$0xff] %v1954_v51  ;;  %2019 = vst [vmem:[%s3681_s21 + $0x38] sm:$0xff] %v1955_v10  ;;  %v1712_v16 = vmul.f32 0.00390625, %v1666_v8  ;;  %v1743_v9 = vadd.f32 1e-12, %v1711_v46  ;;  %v1697_v40 = vmul.f32 0.00390625, %v1621_v53  ;;  %v1956_v35 = vadd.f32 %v3346_v23, %v1874_v5  ;;  %v1624_v59 = vpop.xlane.xlu0 %1623 }
 0x2b6   : > { %v1957_v28 = vadd.f32 %v3350_v32, %v1875_v42  ;;  %v1824_v39 = vmul.f32 %v2476_v19, %v3443_v13  ;;  %v1825_v18 = vmul.f32 %v2476_v19, %v3446_v36  ;;  %v1904_v58 = vmul.f32 %v3336_v17, %v1822_v63 }
 0x2b7   : > { %v1905_v37 = vmul.f32 %v3340_v27, %v1823_v62  ;;  %2487 = vrsqrt.f32 %v1727_v55  ;;  %v1744_v25 = vadd.f32 1e-12, %v1712_v16  ;;  %2020 = vst [vmem:[%s3681_s21 + $0x40] sm:$0xff] %v1956_v35  ;;  %v1698_v38 = vmul.f32 0.00390625, %v1624_v59 }
 0x2b8   : > { %2021 = vst [vmem:[%s3681_s21 + $0x48] sm:$0xff] %v1957_v28  ;;  %v1906_v43 = vmul.f32 %v3336_v17, %v1824_v39  ;;  %v1907_v2 = vmul.f32 %v3340_v27, %v1825_v18  ;;  %2489 = vrsqrt.f32 %v1743_v9  ;;  %v1669_v13 = vpop.xlane.xlu1 %1668  ;;  %v1986_v36 = vadd.f32 %v3346_v23, %v1904_v58  ;;  %v4122_v58 = vld [vmem:[#allocation40_spill] sm:$0xff] }
 0x2b9   : > { %v1987_v30 = vadd.f32 %v3350_v32, %v1905_v37  ;;  %2491 = vrsqrt.f32 %v1744_v25  ;;  %v1729_v24 = vadd.f32 1e-12, %v1697_v40  ;;  %v1730_v45 = vadd.f32 1e-12, %v1698_v38  ;;  %v1672_v22 = vpop.xlane.xlu0 %1671 }
 0x2ba   : > { %v2478_v6 = vpop.eup %2477  ;;  %v1988_v50 = vadd.f32 %v3346_v23, %v1906_v43  ;;  %v1989_v20 = vadd.f32 %v3350_v32, %v1907_v2  ;;  %v1713_v21 = vmul.f32 0.00390625, %v1669_v13  ;;  %2050 = vst [vmem:[%s3681_s21 + $0x130] sm:$0xff] %v1986_v36  ;;  %v1714_v51 = vmul.f32 0.00390625, %v1672_v22 }
 0x2bb   : > { %v2480_v8 = vpop.eup %2479  ;;  %2051 = vst [vmem:[%s3681_s21 + $0x138] sm:$0xff] %v1987_v30  ;;  %v1796_v46 = vmul.f32 %v2478_v6, %v3469_v34  ;;  %v1797_v4 = vmul.f32 %v2478_v6, %v3472_v47  ;;  %2493 = vrsqrt.f32 %v1729_v24 }
 0x2bc   : > { %2052 = vst [vmem:[%s3681_s21 + $0x140] sm:$0xff] %v1988_v50  ;;  %2053 = vst [vmem:[%s3681_s21 + $0x148] sm:$0xff] %v1989_v20  ;;  %v1794_v10 = vmul.f32 %v2480_v8, %v3449_v14  ;;  %v1795_v29 = vmul.f32 %v2480_v8, %v3452_v57  ;;  %2495 = vrsqrt.f32 %v1730_v45  ;;  %v1745_v55 = vadd.f32 1e-12, %v1713_v21  ;;  %v1627_v5 = vpop.xlane.xlu1 %1626  ;;  %v4123_v50 = vld [vmem:[#allocation19_spill] sm:$0xff]  ;;  %v4124_v45 = vld [vmem:[#allocation21_spill] sm:$0xff] }
 0x2bd   : > { %v2482_v42 = vpop.eup %2481  ;;  %v1878_v63 = vmul.f32 %v3336_v17, %v1796_v46  ;;  %v1879_v62 = vmul.f32 %v3340_v27, %v1797_v4  ;;  %v1746_v53 = vadd.f32 1e-12, %v1714_v51  ;;  %v1699_v34 = vmul.f32 0.00390625, %v1627_v5  ;;  %v1630_v16 = vpop.xlane.xlu0 %1629  ;;  %v4125_v5 = vld [vmem:[#allocation41_spill] sm:$0xff] }
 0x2be   : > { %v1876_v47 = vmul.f32 %v3336_v17, %v1794_v10  ;;  %v1877_v19 = vmul.f32 %v3340_v27, %v1795_v29  ;;  %v1826_v14 = vmul.f32 %v2482_v42, %v3463_v61  ;;  %v1827_v57 = vmul.f32 %v2482_v42, %v3466_v56 }
 0x2bf   : > { %v2484_v9 = vpop.eup %2483  ;;  %v1960_v40 = vadd.f32 %v3346_v23, %v1878_v63  ;;  %v1961_v35 = vadd.f32 %v3350_v32, %v1879_v62  ;;  %2497 = vrsqrt.f32 %v1746_v53  ;;  %v1700_v28 = vmul.f32 0.00390625, %v1630_v16  ;;  %v4126_v63 = vld [vmem:[#allocation42_spill] sm:$0xff] }
 0x2c0   : > { %v1958_v39 = vadd.f32 %v3346_v23, %v1876_v47  ;;  %v1959_v18 = vadd.f32 %v3350_v32, %v1877_v19  ;;  %v1828_v59 = vmul.f32 %v2484_v9, %v3483_v33  ;;  %v1829_v61 = vmul.f32 %v2484_v9, %v4122_v58  ;;  %v1675_v37 = vpop.xlane.xlu1 %1674  ;;  %v4128_v19 = vld [vmem:[#allocation20_spill] sm:$0xff] }
 0x2c1   : > { %2024 = vst [vmem:[%s3681_s21 + $0x60] sm:$0xff] %v1960_v40  ;;  %2025 = vst [vmem:[%s3681_s21 + $0x68] sm:$0xff] %v1961_v35  ;;  %v1908_v56 = vmul.f32 %v3336_v17, %v1826_v14  ;;  %v1909_v25 = vmul.f32 %v3340_v27, %v1827_v57  ;;  %2499 = vrsqrt.f32 %v1745_v55  ;;  %v1732_v43 = vadd.f32 1e-12, %v1700_v28  ;;  %v2486_v2 = vpop.eup %2485  ;;  %v1678_v36 = vpop.xlane.xlu0 %1677 }
 0x2c2   : > { %2022 = vst [vmem:[%s3681_s21 + $0x50] sm:$0xff] %v1958_v39  ;;  %2023 = vst [vmem:[%s3681_s21 + $0x58] sm:$0xff] %v1959_v18  ;;  %v1910_v38 = vmul.f32 %v3336_v17, %v1828_v59  ;;  %v1911_v13 = vmul.f32 %v3340_v27, %v1829_v61  ;;  %v1731_v33 = vadd.f32 1e-12, %v1699_v34  ;;  %v1715_v30 = vmul.f32 0.00390625, %v1675_v37  ;;  %v4127_v34 = vld [vmem:[#allocation43_spill] sm:$0xff] }
 0x2c3   : > { %v1990_v24 = vadd.f32 %v3346_v23, %v1908_v56  ;;  %v1991_v6 = vadd.f32 %v3350_v32, %v1909_v25  ;;  %v1800_v20 = vmul.f32 %v2486_v2, %v4123_v50  ;;  %v1801_v22 = vmul.f32 %v2486_v2, %v4124_v45  ;;  %v4129_v39 = vld [vmem:[#allocation22_spill] sm:$0xff]  ;;  %v4130_v59 = vld [vmem:[#allocation23_spill] sm:$0xff] }
 0x2c4   : > { %v2488_v21 = vpop.eup %2487  ;;  %v1992_v8 = vadd.f32 %v3346_v23, %v1910_v38  ;;  %v1993_v46 = vadd.f32 %v3350_v32, %v1911_v13  ;;  %2501 = vrsqrt.f32 %v1732_v43  ;;  %v1716_v4 = vmul.f32 0.00390625, %v1678_v36  ;;  %v3785_v51 = vpop.xlane.xlu1 %1632  ;;  %v4131_v13 = vld [vmem:[#allocation25_spill] sm:$0xff]  ;;  %v4132_v36 = vld [vmem:[#allocation24_spill] sm:$0xff] }
 0x2c5   : > { %v2490_v10 = vpop.eup %2489  ;;  %2054 = vst [vmem:[%s3681_s21 + $0x150] sm:$0xff] %v1990_v24  ;;  %2055 = vst [vmem:[%s3681_s21 + $0x158] sm:$0xff] %v1991_v6  ;;  %v1882_v29 = vmul.f32 %v3336_v17, %v1800_v20  ;;  %v1883_v55 = vmul.f32 %v3340_v27, %v1801_v22  ;;  %v1798_v42 = vmul.f32 %v2488_v21, %v4125_v5  ;;  %2503 = vrsqrt.f32 %v1731_v33  ;;  %v1636_v56 = vpop.xlane.xlu0 %1635  ;;  %v4133_v22 = vld [vmem:[#allocation27_spill] sm:$0xff] }
 0x2c6   : > { %v1799_v62 = vmul.f32 %v2488_v21, %v4126_v63  ;;  %v2492_v53 = vpop.eup %2491  ;;  %2056 = vst [vmem:[%s3681_s21 + $0x160] sm:$0xff] %v1992_v8  ;;  %2057 = vst [vmem:[%s3681_s21 + $0x168] sm:$0xff] %v1993_v46  ;;  %v1830_v47 = vmul.f32 %v2490_v10, %v4127_v34  ;;  %v1831_v14 = vmul.f32 %v2490_v10, %v4128_v19  ;;  %v1748_v57 = vadd.f32 1e-12, %v1716_v4  ;;  %v4134_v8 = vld [vmem:[#allocation29_spill] sm:$0xff] }
 0x2c7   : > { %v1964_v16 = vadd.f32 %v3346_v23, %v1882_v29  ;;  %v1965_v9 = vadd.f32 %v3350_v32, %v1883_v55  ;;  %v1880_v40 = vmul.f32 %v3336_v17, %v1798_v42  ;;  %v1832_v18 = vmul.f32 %v2492_v53, %v4129_v39  ;;  %v4136_v39 = vld [vmem:[#allocation28_spill] sm:$0xff] }
 0x2c8   : > { %v1881_v35 = vmul.f32 %v3340_v27, %v1799_v62  ;;  %v2494_v28 = vpop.eup %2493  ;;  %v1833_v58 = vmul.f32 %v2492_v53, %v4130_v59  ;;  %v1912_v61 = vmul.f32 %v3336_v17, %v1830_v47  ;;  %v1913_v37 = vmul.f32 %v3340_v27, %v1831_v14  ;;  %v1681_v25 = vpop.xlane.xlu1 %1680 }
 0x2c9   : > { %v2496_v43 = vpop.eup %2495  ;;  %2028 = vst [vmem:[%s3681_s21 + $0x80] sm:$0xff] %v1964_v16  ;;  %2029 = vst [vmem:[%s3681_s21 + $0x88] sm:$0xff] %v1965_v9  ;;  %v1962_v2 = vadd.f32 %v3346_v23, %v1880_v40  ;;  %v1802_v33 = vmul.f32 %v2494_v28, %v4131_v13  ;;  %v1803_v24 = vmul.f32 %v2494_v28, %v4132_v36  ;;  %2505 = vrsqrt.f32 %v1748_v57  ;;  %v1684_v57 = vpop.xlane.xlu0 %1683 }
 0x2ca   : > { %v1963_v38 = vadd.f32 %v3350_v32, %v1881_v35  ;;  %v1914_v6 = vmul.f32 %v3336_v17, %v1832_v18  ;;  %v1915_v50 = vmul.f32 %v3340_v27, %v1833_v58  ;;  %v1994_v20 = vadd.f32 %v3346_v23, %v1912_v61  ;;  %v4135_v35 = vld [vmem:[#allocation26_spill] sm:$0xff] }
 0x2cb   : > { %v1995_v45 = vadd.f32 %v3350_v32, %v1913_v37  ;;  %2026 = vst [vmem:[%s3681_s21 + $0x70] sm:$0xff] %v1962_v2  ;;  %v1804_v21 = vmul.f32 %v2496_v43, %v4133_v22  ;;  %v1805_v46 = vmul.f32 %v2496_v43, %v4134_v8  ;;  %v1884_v4 = vmul.f32 %v3336_v17, %v1802_v33  ;;  %v4138_v22 = vld [vmem:[#allocation30_spill] sm:$0xff]  ;;  %v4139_v8 = vld [vmem:[#allocation31_spill] sm:$0xff] }
 0x2cc   : > { %2027 = vst [vmem:[%s3681_s21 + $0x78] sm:$0xff] %v1963_v38  ;;  %v1885_v10 = vmul.f32 %v3340_v27, %v1803_v24  ;;  %v2498_v29 = vpop.eup %2497  ;;  %v1996_v55 = vadd.f32 %v3346_v23, %v1914_v6  ;;  %v1997_v5 = vadd.f32 %v3350_v32, %v1915_v50  ;;  %2058 = vst [vmem:[%s3681_s21 + $0x170] sm:$0xff] %v1994_v20  ;;  %v1747_v42 = vadd.f32 1e-12, %v1715_v30  ;;  %v1639_v16 = vpop.xlane.xlu1 %1638 }
 0x2cd   : > { %2059 = vst [vmem:[%s3681_s21 + $0x178] sm:$0xff] %v1995_v45  ;;  %v1886_v63 = vmul.f32 %v3336_v17, %v1804_v21  ;;  %v1887_v62 = vmul.f32 %v3340_v27, %v1805_v46  ;;  %v1966_v53 = vadd.f32 %v3346_v23, %v1884_v4  ;;  %v1836_v19 = vmul.f32 %v2498_v29, %v3563_v31 }
 0x2ce   : > { %v1967_v34 = vadd.f32 %v3350_v32, %v1885_v10  ;;  %v2500_v47 = vpop.eup %2499  ;;  %2060 = vst [vmem:[%s3681_s21 + $0x180] sm:$0xff] %v1996_v55  ;;  %2061 = vst [vmem:[%s3681_s21 + $0x188] sm:$0xff] %v1997_v5  ;;  %v1837_v14 = vmul.f32 %v2498_v29, %v3566_v41  ;;  %2507 = vrsqrt.f32 %v1747_v42  ;;  %v1702_v30 = vmul.f32 0.00390625, %v1636_v56 }
 0x2cf   : > { %v1968_v9 = vadd.f32 %v3346_v23, %v1886_v63  ;;  %v1969_v40 = vadd.f32 %v3350_v32, %v1887_v62  ;;  %2030 = vst [vmem:[%s3681_s21 + $0x90] sm:$0xff] %v1966_v53  ;;  %v1834_v28 = vmul.f32 %v2500_v47, %v4135_v35  ;;  %v1835_v18 = vmul.f32 %v2500_v47, %v4136_v39  ;;  %v4140_v35 = vld [vmem:[#allocation33_spill] sm:$0xff]  ;;  %v4141_v39 = vld [vmem:[#allocation32_spill] sm:$0xff] }
 0x2d0   : > { %2031 = vst [vmem:[%s3681_s21 + $0x98] sm:$0xff] %v1967_v34  ;;  %v1918_v31 = vmul.f32 %v3336_v17, %v1836_v19  ;;  %v1919_v41 = vmul.f32 %v3340_v27, %v1837_v14  ;;  %v1734_v59 = vadd.f32 1e-12, %v1702_v30  ;;  %v1701_v58 = vmul.f32 0.00390625, %v3785_v51  ;;  %v4137_v51 = vld [vmem:[#allocation34_spill] sm:$0xff]  ;;  %v1687_v46 = vpop.xlane.xlu1 %1686 }
 0x2d1   : > { %v2502_v61 = vpop.eup %2501  ;;  %2032 = vst [vmem:[%s3681_s21 + $0xa0] sm:$0xff] %v1968_v9  ;;  %2033 = vst [vmem:[%s3681_s21 + $0xa8] sm:$0xff] %v1969_v40  ;;  %v1916_v37 = vmul.f32 %v3336_v17, %v1834_v28  ;;  %v1917_v56 = vmul.f32 %v3340_v27, %v1835_v18  ;;  %v1718_v43 = vmul.f32 0.00390625, %v1684_v57  ;;  %v1717_v2 = vmul.f32 0.00390625, %v1681_v25 }
 0x2d2   : > { %v2000_v38 = vadd.f32 %v3346_v23, %v1918_v31  ;;  %v2001_v13 = vadd.f32 %v3350_v32, %v1919_v41  ;;  %v1808_v33 = vmul.f32 %v2502_v61, %v3589_v54  ;;  %v1809_v36 = vmul.f32 %v2502_v61, %v4137_v51  ;;  %v2504_v24 = vpop.eup %2503 }
 0x2d3   : > { %v1998_v6 = vadd.f32 %v3346_v23, %v1916_v37  ;;  %v1999_v50 = vadd.f32 %v3350_v32, %v1917_v56  ;;  %2509 = vrsqrt.f32 %v1734_v59  ;;  %v1733_v20 = vadd.f32 1e-12, %v1701_v58 }
 0x2d4   : > { %2064 = vst [vmem:[%s3681_s21 + $0x1a0] sm:$0xff] %v2000_v38  ;;  %2065 = vst [vmem:[%s3681_s21 + $0x1a8] sm:$0xff] %v2001_v13  ;;  %v1890_v25 = vmul.f32 %v3336_v17, %v1808_v33  ;;  %v1891_v45 = vmul.f32 %v3340_v27, %v1809_v36  ;;  %v1806_v21 = vmul.f32 %v2504_v24, %v4138_v22  ;;  %v1750_v4 = vadd.f32 1e-12, %v1718_v43 }
 0x2d5   : > { %v1807_v54 = vmul.f32 %v2504_v24, %v4139_v8  ;;  %2062 = vst [vmem:[%s3681_s21 + $0x190] sm:$0xff] %v1998_v6  ;;  %2063 = vst [vmem:[%s3681_s21 + $0x198] sm:$0xff] %v1999_v50  ;;  %2511 = vrsqrt.f32 %v1733_v20  ;;  %v1749_v10 = vadd.f32 1e-12, %v1717_v2  ;;  %v1703_v29 = vmul.f32 0.00390625, %v1639_v16 }
 0x2d6   : > { %v1972_v55 = vadd.f32 %v3346_v23, %v1890_v25  ;;  %v1973_v5 = vadd.f32 %v3350_v32, %v1891_v45  ;;  %v1888_v42 = vmul.f32 %v3336_v17, %v1806_v21  ;;  %2513 = vrsqrt.f32 %v1750_v4  ;;  %v2506_v19 = vpop.eup %2505  ;;  %v4142_v4 = vld [vmem:[#allocation35_spill] sm:$0xff] }
 0x2d7   : > { %v1889_v63 = vmul.f32 %v3340_v27, %v1807_v54  ;;  %v1735_v62 = vadd.f32 1e-12, %v1703_v29  ;;  %v1719_v53 = vmul.f32 0.00390625, %v1687_v46  ;;  %2515 = vrsqrt.f32 %v1749_v10 }
 0x2d8   : > { %2036 = vst [vmem:[%s3681_s21 + $0xc0] sm:$0xff] %v1972_v55  ;;  %2037 = vst [vmem:[%s3681_s21 + $0xc8] sm:$0xff] %v1973_v5  ;;  %v1970_v34 = vadd.f32 %v3346_v23, %v1888_v42  ;;  %v1840_v30 = vmul.f32 %v2506_v19, %v3603_v0  ;;  %v1841_v57 = vmul.f32 %v2506_v19, %v3606_v49 }
 0x2d9   : > { %v1971_v47 = vadd.f32 %v3350_v32, %v1889_v63  ;;  %2517 = vrsqrt.f32 %v1735_v62  ;;  %v1751_v14 = vadd.f32 1e-12, %v1719_v53 }
 0x2da   : > { %2034 = vst [vmem:[%s3681_s21 + $0xb0] sm:$0xff] %v1970_v34  ;;  %v1922_v9 = vmul.f32 %v3336_v17, %v1840_v30  ;;  %v1923_v40 = vmul.f32 %v3340_v27, %v1841_v57 }
 0x2db   : > { %2035 = vst [vmem:[%s3681_s21 + $0xb8] sm:$0xff] %v1971_v47  ;;  %v2508_v16 = vpop.eup %2507  ;;  %2519 = vrsqrt.f32 %v1751_v14 }
 0x2dc   : > { %v1838_v28 = vmul.f32 %v2508_v16, %v4140_v35  ;;  %v1839_v18 = vmul.f32 %v2508_v16, %v4141_v39  ;;  %v2004_v31 = vadd.f32 %v3346_v23, %v1922_v9  ;;  %v2005_v41 = vadd.f32 %v3350_v32, %v1923_v40 }
 0x2de   : > { %v1920_v0 = vmul.f32 %v3336_v17, %v1838_v28  ;;  %v1921_v49 = vmul.f32 %v3340_v27, %v1839_v18  ;;  %2068 = vst [vmem:[%s3681_s21 + $0x1c0] sm:$0xff] %v2004_v31  ;;  %2069 = vst [vmem:[%s3681_s21 + $0x1c8] sm:$0xff] %v2005_v41 }
 0x2e0   : > { %v2510_v59 = vpop.eup %2509  ;;  %v2002_v58 = vadd.f32 %v3346_v23, %v1920_v0  ;;  %v2003_v61 = vadd.f32 %v3350_v32, %v1921_v49 }
 0x2e1   : > { %v1812_v37 = vmul.f32 %v2510_v59, %v3629_v3  ;;  %v1813_v56 = vmul.f32 %v2510_v59, %v3632_v1 }
 0x2e2   : > { %v2512_v43 = vpop.eup %2511  ;;  %2066 = vst [vmem:[%s3681_s21 + $0x1b0] sm:$0xff] %v2002_v58  ;;  %2067 = vst [vmem:[%s3681_s21 + $0x1b8] sm:$0xff] %v2003_v61 }
 0x2e3   : > { %v1894_v2 = vmul.f32 %v3336_v17, %v1812_v37  ;;  %v1895_v38 = vmul.f32 %v3340_v27, %v1813_v56  ;;  %v1810_v13 = vmul.f32 %v2512_v43, %v3609_v11  ;;  %v1811_v33 = vmul.f32 %v2512_v43, %v3612_v60  ;;  %v2514_v51 = vpop.eup %2513 }
 0x2e4   : > { %v2516_v36 = vpop.eup %2515  ;;  %v1844_v20 = vmul.f32 %v2514_v51, %v3643_v12  ;;  %v1845_v25 = vmul.f32 %v2514_v51, %v3646_v44 }
 0x2e5   : > { %v1976_v24 = vadd.f32 %v3346_v23, %v1894_v2  ;;  %v1977_v3 = vadd.f32 %v3350_v32, %v1895_v38  ;;  %v1892_v1 = vmul.f32 %v3336_v17, %v1810_v13  ;;  %v1893_v6 = vmul.f32 %v3340_v27, %v1811_v33 }
 0x2e6   : > { %v2518_v50 = vpop.eup %2517  ;;  %v1842_v11 = vmul.f32 %v2516_v36, %v3623_v26  ;;  %v1843_v60 = vmul.f32 %v2516_v36, %v3626_v52  ;;  %v1926_v54 = vmul.f32 %v3336_v17, %v1844_v20  ;;  %v1927_v44 = vmul.f32 %v3340_v27, %v1845_v25 }
 0x2e7   : > { %2040 = vst [vmem:[%s3681_s21 + $0xe0] sm:$0xff] %v1976_v24  ;;  %2041 = vst [vmem:[%s3681_s21 + $0xe8] sm:$0xff] %v1977_v3  ;;  %v1974_v45 = vadd.f32 %v3346_v23, %v1892_v1  ;;  %v1975_v22 = vadd.f32 %v3350_v32, %v1893_v6  ;;  %v1814_v21 = vmul.f32 %v2518_v50, %v3649_v48 }
 0x2e8   : > { %v1815_v8 = vmul.f32 %v2518_v50, %v3652_v15  ;;  %v2520_v12 = vpop.eup %2519  ;;  %v1924_v26 = vmul.f32 %v3336_v17, %v1842_v11  ;;  %v1925_v52 = vmul.f32 %v3340_v27, %v1843_v60  ;;  %v2008_v29 = vadd.f32 %v3346_v23, %v1926_v54 }
 0x2e9   : > { %2038 = vst [vmem:[%s3681_s21 + $0xd0] sm:$0xff] %v1974_v45  ;;  %2039 = vst [vmem:[%s3681_s21 + $0xd8] sm:$0xff] %v1975_v22  ;;  %v1896_v46 = vmul.f32 %v3336_v17, %v1814_v21  ;;  %v1846_v15 = vmul.f32 %v2520_v12, %v3663_v7  ;;  %v1847_v10 = vmul.f32 %v2520_v12, %v4142_v4 }
 0x2ea   : > { %v1897_v48 = vmul.f32 %v3340_v27, %v1815_v8  ;;  %v2009_v55 = vadd.f32 %v3350_v32, %v1927_v44  ;;  %v2006_v5 = vadd.f32 %v3346_v23, %v1924_v26  ;;  %v2007_v42 = vadd.f32 %v3350_v32, %v1925_v52  ;;  %2072 = vst [vmem:[%s3681_s21 + $0x1e0] sm:$0xff] %v2008_v29 }
 0x2eb   : > { %v1978_v63 = vadd.f32 %v3346_v23, %v1896_v46  ;;  %v1928_v62 = vmul.f32 %v3336_v17, %v1846_v15  ;;  %v1929_v53 = vmul.f32 %v3340_v27, %v1847_v10 }
 0x2ec   : > { %v1979_v7 = vadd.f32 %v3350_v32, %v1897_v48  ;;  %2073 = vst [vmem:[%s3681_s21 + $0x1e8] sm:$0xff] %v2009_v55  ;;  %2070 = vst [vmem:[%s3681_s21 + $0x1d0] sm:$0xff] %v2006_v5 }
 0x2ed   : > { %2071 = vst [vmem:[%s3681_s21 + $0x1d8] sm:$0xff] %v2007_v42  ;;  %2042 = vst [vmem:[%s3681_s21 + $0xf0] sm:$0xff] %v1978_v63  ;;  %v2010_v17 = vadd.f32 %v3346_v23, %v1928_v62  ;;  %v2011_v27 = vadd.f32 %v3350_v32, %v1929_v53 }
 0x2ee   : > { %2043 = vst [vmem:[%s3681_s21 + $0xf8] sm:$0xff] %v1979_v7 }
 0x2ef   : > { %2074 = vst [vmem:[%s3681_s21 + $0x1f0] sm:$0xff] %v2010_v17  ;;  %2075 = vst [vmem:[%s3681_s21 + $0x1f8] sm:$0xff] %v2011_v27 }
 0x2f0   : > { %2642 = shalt.err (!%p2639_p1)
}
 0x2f1   : > { %s2643_s26 = scalar_lea.hbm %s3933_s10, 8192  ;;  %s2647_s7 = scalar_lea.hbm %s3993_s4, 16384 }
 0x2f2   : > { %p2644_p2 = scmp.ne.s32.totalorder %s3933_s10, %s2643_s26  ;;  %p2648_p13 = scmp.lt.s32.totalorder %s3933_s10, %s3993_s4 }
 0x2f3   : > { %p2649_p0 = scmp.lt.s32.totalorder %s2647_s7, %s2643_s26 }
 0x2f4   : > { %p2645_p6 = pnand %p2644_p2, %p2850_p9 }
 0x2f5   : > { %p2650_p12 = por %p2649_p0, %p2648_p13 }
 0x2f6   : > { %p2646_p8 = pneg %p2645_p6 }
 0x2f8   : > { %p2651_p4 = pnand %p2650_p12, %p2646_p8 }
 0x2fa   : > { %2654 = shalt.err (!%p2651_p4)
}
 0x2fb   : > { %s2732_s3 = smov 256   ;;  %s2733_s25 = smov 16  }
 0x2fc   : > { %2327 = dma.vmem_to_hbm [thread:$0]  (%p2850_p9), %s3935_s30, 8192, %s3933_s10, %s2077_s11, %s2732_s3, %s2732_s3, %s2733_s25  }
 0x2fd PF: > { %s2106_s28 = sand.u32 1, %s2701_s15   ;;  %p4143_p3 = scmp.ne.s32.totalorder %s4042_s24, 0 }
 0x2fe   : > { %p4144_p7 = scmp.ge.s32.totalorder %s2721_s20, 2  ;;  %s2107_s29 = scalar_lea.sflag [#allocation5], %s2106_s28 }
 0x300   : > { %p2344_p11 = pnand %p4144_p7, %p4143_p3 }
 0x302   : > { %p2345_p5 = pneg %p2344_p11 }
 0x304   : > { %2696 = dma.done.wait (%p2345_p5), %s2107_s29, 8192  }
 0x305   : > { %2698 = vsyncadd (%p2345_p5), %s2107_s29, 4294959104  ;;  %s24_s20 = sadd.s32 1, %s2721_s20   ;;  %s4145_s22 = sld [smem:[#allocation18_spill]] }
 0x306   : > { %p21_p10 = scmp.ge.s32.totalorder %s24_s20, 4   ;;  %s4146_s0 = sld [smem:[#allocation17_spill]] }
 0x307   : > { %s4147_s15 = smov %s2705_s16  ;;  %s4148_s16 = smov %s2709_s17 }
 0x308   : > { %s4150_s18 = smov %s2717_s19  ;;  %23 = sbr.rel (!%p21_p10) target bundleno = 13 (0xd), region = 111 }
 0x30b   : > { %s4149_s17 = smov %s4145_s22 }
 0x30c   : > { %s4151_s19 = smov %s4146_s0 }
 0x30d   :  { %2112 = vsyncpa [#allocation4], 1 }
 0x30e   :  { %2114 = vsyncpa [#allocation4 + $0x1], 1 }
 0x30f   :  { %2115 = vsyncpa [#allocation7], 1 }
 0x310   :  { %2117 = vsyncpa [#allocation7 + $0x1], 1 }
 0x311   :  { %2118 = vsyncpa [#allocation10], 1 }
 0x312   :  { %2119 = vsyncpa [#allocation5], 1 }
 0x313   :  { %2121 = vsyncpa [#allocation5 + $0x1], 1 }

</bundles_post_ra>
